<compile_context>
chip_gen: v7x
topology: tpu7x:2x2x1
jax: 0.10.0
libtpu: 0.0.40
codegen_flags: <defaults>
</compile_context>

<pallas_src>
import jax
import jax.numpy as jnp
from jax import lax
from jax.experimental import pallas as pl
from jax.experimental.pallas import tpu as pltpu

# --- Config (mirrors the PyTorch Config) ---
CLASS_NUM = 2
VOCAB_DIM = 64          # embedding dim (E)
VOCAB_SIZE = 1024       # V
HIDDEN = 128            # rnn_hidden_size (H)
FC1_IN = HIDDEN * 2     # 256  (bidirectional)
FC1_OUT = FC1_IN // 2   # 128


def rnn_kernel(tok_ref,        # SMEM (T*B,) int32, time-major token ids
               embed_ref,      # VMEM (V, E)      f32 embedding table
               w_in_ref,       # VMEM (E, 7H)     fwd [i,f,o,g] | bwd [i,o,g] input proj
               b_in_ref,       # VMEM (1, 7H)     merged ih+hh biases, same column order
               whh_f_ref,      # VMEM (H, 4H)     forward hidden->gates, [i,f,o,g]
               w_fc_ref,       # VMEM (2H, C)     fused fc1·fc2 weight
               b_fc_ref,       # VMEM (1, C)      fused fc1·fc2 bias
               y_ref,          # out  (B, C)
               x_scr):         # VMEM scratch (T*B, E) gathered embeddings
    TB, _ = x_scr.shape
    H = whh_f_ref.shape[0]
    B = y_ref.shape[0]
    T = TB // B

    # ---- Embedding gather: direct dynamic row loads (no one-hot matmul) -------
    for r in range(TB):                         # static unroll, T*B = 16
        tok = tok_ref[r]
        x_scr[pl.ds(r, 1), :] = embed_ref[pl.ds(tok, 1), :]
    x_all = x_scr[...]                          # (T*B, E), time-major

    # ---- Hoisted input projection: both directions in ONE matmul --------------
    proj = (jnp.dot(x_all, w_in_ref[...], preferred_element_type=jnp.float32)
            + b_in_ref[...])                    # (T*B, 7H)
    xproj_f = proj[:, :4 * H]                   # forward gate pre-activations

    # ---- Forward LSTM recurrence, statically unrolled (T = 8) -----------------
    whh_f = whh_f_ref[...]                      # read once; same RHS every step
    h = jnp.zeros((B, H), jnp.float32)
    c = jnp.zeros((B, H), jnp.float32)
    for t in range(T):
        gates = (xproj_f[t * B:(t + 1) * B, :]
                 + jnp.dot(h, whh_f, preferred_element_type=jnp.float32))
        s = jax.nn.sigmoid(gates[:, :3 * H])    # i | f | o in one EUP pass
        i = s[:, 0:H]
        f = s[:, H:2 * H]
        o = s[:, 2 * H:3 * H]
        g = jnp.tanh(gates[:, 3 * H:4 * H])
        c = f * c + i * g
        h = o * jnp.tanh(c)
    h_fwd = h

    # ---- Backward direction ----------------------------------------------------
    # Only its FIRST step (input x[T-1], zero h0/c0) feeds r_out[:, -1, H:]:
    # zero state kills the W_hh matmul and the f-gate (c_new = i*g).
    gb = proj[(T - 1) * B:T * B, 4 * H:]        # (B, 3H): [i, o, g]
    sb = jax.nn.sigmoid(gb[:, :2 * H])          # i | o in one EUP pass
    i_b = sb[:, 0:H]
    o_b = sb[:, H:2 * H]
    g_b = jnp.tanh(gb[:, 2 * H:3 * H])
    h_bwd = o_b * jnp.tanh(i_b * g_b)

    # ---- relu(r_out[:, -1, :]) -> fused (fc1 ∘ dropout(p=0) ∘ fc2) -------------
    r_last = jnp.maximum(jnp.concatenate([h_fwd, h_bwd], axis=-1), 0.0)
    y_ref[...] = (jnp.dot(r_last, w_fc_ref[...], preferred_element_type=jnp.float32)
                  + b_fc_ref[...])


def rnn_forward(token_ids, kparams):
    """token_ids: (B, T) int32.  Returns logits (B, CLASS_NUM) f32."""
    B, T = token_ids.shape
    tok_flat = jnp.transpose(token_ids.astype(jnp.int32)).reshape(-1)  # (T*B,) time-major
    vmem = pl.BlockSpec(memory_space=pltpu.MemorySpace.VMEM)
    smem = pl.BlockSpec(memory_space=pltpu.MemorySpace.SMEM)
    return pl.pallas_call(
        rnn_kernel,
        out_shape=jax.ShapeDtypeStruct((B, CLASS_NUM), jnp.float32),
        in_specs=[smem] + [vmem] * 6,
        out_specs=vmem,
        scratch_shapes=[pltpu.VMEM((T * B, VOCAB_DIM), jnp.float32)],
    )(
        tok_flat,
        kparams["embed"],
        kparams["w_in"], kparams["b_in"],
        kparams["whh_f"],
        kparams["w_fc"], kparams["b_fc"],
    )


def make_params(key):
    """PyTorch-native parameter tensors (for the reference path)."""
    ks = jax.random.split(key, 12)
    H, E = HIDDEN, VOCAB_DIM
    lstm_bound = 1.0 / jnp.sqrt(H)

    def uni(k, shape, bound):
        return jax.random.uniform(k, shape, jnp.float32, -bound, bound)

    return {
        "embed": jax.random.normal(ks[0], (VOCAB_SIZE, E), jnp.float32),
        "wih_f": uni(ks[1], (4 * H, E), lstm_bound),
        "whh_f": uni(ks[2], (4 * H, H), lstm_bound),
        "bih_f": uni(ks[3], (4 * H,), lstm_bound),
        "bhh_f": uni(ks[4], (4 * H,), lstm_bound),
        "wih_b": uni(ks[5], (4 * H, E), lstm_bound),
        "whh_b": uni(ks[6], (4 * H, H), lstm_bound),
        "bih_b": uni(ks[7], (4 * H,), lstm_bound),
        "bhh_b": uni(ks[8], (4 * H,), lstm_bound),
        "w1": uni(ks[9], (FC1_OUT, FC1_IN), 1.0 / jnp.sqrt(FC1_IN)),
        "b1": uni(ks[10], (FC1_OUT,), 1.0 / jnp.sqrt(FC1_IN)),
        "w2": uni(ks[11], (CLASS_NUM, FC1_OUT), 1.0 / jnp.sqrt(FC1_OUT)),
        "b2": jnp.zeros((CLASS_NUM,), jnp.float32),
    }


def prep_kernel_params(p):
    """Host-side reshuffle: gate permutation, fwd/bwd fusion, fc1·fc2 fusion."""
    H = HIDDEN

    def rows(w, order):  # select H-sized row blocks of a (4H, ...) tensor
        return jnp.concatenate([w[g * H:(g + 1) * H] for g in order], axis=0)

    IFOG = (0, 1, 3, 2)  # PyTorch gate order [i,f,g,o] -> kernel fwd [i,f,o,g]
    IOG = (0, 3, 2)      # backward: f-gate dead (c0 = 0)        -> [i,o,g]

    wih_f = rows(p["wih_f"], IFOG)                      # (4H, E)
    whh_f = rows(p["whh_f"], IFOG)                      # (4H, H)
    b_f = rows(p["bih_f"] + p["bhh_f"], IFOG)           # (4H,)
    wih_b = rows(p["wih_b"], IOG)                       # (3H, E)
    b_b = rows(p["bih_b"] + p["bhh_b"], IOG)            # (3H,)

    w_in = jnp.concatenate([wih_f.T, wih_b.T], axis=1)  # (E, 7H)
    b_in = jnp.concatenate([b_f, b_b])[None, :]         # (1, 7H)

    # dropout(p=0) is identity and there is no nonlinearity between fc1 and fc2.
    w_fc = p["w1"].T @ p["w2"].T                         # (2H, C)
    b_fc = (p["b1"] @ p["w2"].T + p["b2"])[None, :]      # (1, C)

    return {
        "embed": p["embed"],
        "w_in": w_in, "b_in": b_in,
        "whh_f": whh_f.T,                                # (H, 4H)
        "w_fc": w_fc, "b_fc": b_fc,
    }


def rnn_forward_ref(token_ids, p):
    """Pure-JAX reference: full scan-based bi-LSTM with PyTorch conventions."""
    H = HIDDEN
    B = token_ids.shape[0]
    emb = p["embed"][token_ids]                  # (B, T, E)
    x_tbe = jnp.transpose(emb, (1, 0, 2))        # (T, B, E)

    def cell(x_t, h, c, wih, whh, bih, bhh):
        gates = x_t @ wih.T + bih + h @ whh.T + bhh
        i = jax.nn.sigmoid(gates[:, 0:H])
        f = jax.nn.sigmoid(gates[:, H:2 * H])
        g = jnp.tanh(gates[:, 2 * H:3 * H])
        o = jax.nn.sigmoid(gates[:, 3 * H:4 * H])
        c_new = f * c + i * g
        return o * jnp.tanh(c_new), c_new

    h0 = jnp.zeros((B, H), jnp.float32)
    c0 = jnp.zeros((B, H), jnp.float32)

    def scan_dir(xs, wih, whh, bih, bhh):
        def step(carry, x_t):
            h, c = cell(x_t, carry[0], carry[1], wih, whh, bih, bhh)
            return (h, c), h
        _, hs = lax.scan(step, (h0, c0), xs)
        return hs                                # (T, B, H)

    hs_f = scan_dir(x_tbe, p["wih_f"], p["whh_f"], p["bih_f"], p["bhh_f"])
    hs_b_rev = scan_dir(x_tbe[::-1], p["wih_b"], p["whh_b"], p["bih_b"], p["bhh_b"])
    # r_out[:, -1, :] = [forward state at t=T-1 | backward state at t=T-1 (its first step)]
    r_last = jnp.concatenate([hs_f[-1], hs_b_rev[0]], axis=-1)
    r_last = jnp.maximum(r_last, 0.0)
    x1 = r_last @ p["w1"].T + p["b1"]            # dropout(p=0) == identity
    return x1 @ p["w2"].T + p["b2"]


if __name__ == "__main__":
    B, T = 2, 8
    key = jax.random.PRNGKey(0)
    k_tok, k_param = jax.random.split(key)
    token_ids = jax.random.randint(k_tok, (B, T), 0, VOCAB_SIZE, dtype=jnp.int32)

    params = make_params(k_param)
    kparams = prep_kernel_params(params)

    y = jax.block_until_ready(rnn_forward(token_ids, kparams))
    y_ref = jax.block_until_ready(rnn_forward_ref(token_ids, params))

    assert y.shape == (B, CLASS_NUM)
    assert jnp.allclose(y, y_ref, atol=1e-4, rtol=1e-4), (y, y_ref)
    print("KERNEL_OK")
</pallas_src>

<mosaic_0001>
module attributes {stable_mosaic.version = 11 : i64} {
  func.func @rnn_kernel(%arg0: memref<16xi32, #tpu.memory_space<smem>>, %arg1: memref<1024x64xf32, #tpu.memory_space<vmem>>, %arg2: memref<64x896xf32, #tpu.memory_space<vmem>>, %arg3: memref<1x896xf32, #tpu.memory_space<vmem>>, %arg4: memref<128x512xf32, #tpu.memory_space<vmem>>, %arg5: memref<256x2xf32, #tpu.memory_space<vmem>>, %arg6: memref<1x2xf32, #tpu.memory_space<vmem>>, %arg7: memref<2x2xf32, #tpu.memory_space<vmem>>, %arg8: memref<16x64xf32, #tpu.memory_space<vmem>>) attributes {dimension_semantics = [], scalar_prefetch = 0 : i64, scratch_operands = 1 : i64, tpu.core_type = #tpu.core_type<tc>} {
    %c0 = arith.constant 0 : index
    %0 = memref.load %arg0[%c0] : memref<16xi32, #tpu.memory_space<smem>>
    %1 = arith.index_cast %0 : i32 to index
    %c0_0 = arith.constant 0 : index
    %2 = vector.load %arg1[%1, %c0_0] : memref<1024x64xf32, #tpu.memory_space<vmem>>, vector<1x64xf32>
    %c0_1 = arith.constant 0 : index
    %c0_2 = arith.constant 0 : index
    %3 = vector.load %arg8[%c0_1, %c0_2] : memref<16x64xf32, #tpu.memory_space<vmem>>, vector<1x64xf32>
    tpu.vector_store %arg8[%c0_1, %c0_2], %2 {strides = array<i32>} : memref<16x64xf32, #tpu.memory_space<vmem>>, vector<1x64xf32>,
    %c1 = arith.constant 1 : index
    %4 = memref.load %arg0[%c1] : memref<16xi32, #tpu.memory_space<smem>>
    %5 = arith.index_cast %4 : i32 to index
    %c0_3 = arith.constant 0 : index
    %6 = vector.load %arg1[%5, %c0_3] : memref<1024x64xf32, #tpu.memory_space<vmem>>, vector<1x64xf32>
    %c1_4 = arith.constant 1 : index
    %c0_5 = arith.constant 0 : index
    %7 = vector.load %arg8[%c1_4, %c0_5] : memref<16x64xf32, #tpu.memory_space<vmem>>, vector<1x64xf32>
    tpu.vector_store %arg8[%c1_4, %c0_5], %6 {strides = array<i32>} : memref<16x64xf32, #tpu.memory_space<vmem>>, vector<1x64xf32>,
    %c2 = arith.constant 2 : index
    %8 = memref.load %arg0[%c2] : memref<16xi32, #tpu.memory_space<smem>>
    %9 = arith.index_cast %8 : i32 to index
    %c0_6 = arith.constant 0 : index
    %10 = vector.load %arg1[%9, %c0_6] : memref<1024x64xf32, #tpu.memory_space<vmem>>, vector<1x64xf32>
    %c2_7 = arith.constant 2 : index
    %c0_8 = arith.constant 0 : index
    %11 = vector.load %arg8[%c2_7, %c0_8] : memref<16x64xf32, #tpu.memory_space<vmem>>, vector<1x64xf32>
    tpu.vector_store %arg8[%c2_7, %c0_8], %10 {strides = array<i32>} : memref<16x64xf32, #tpu.memory_space<vmem>>, vector<1x64xf32>,
    %c3 = arith.constant 3 : index
    %12 = memref.load %arg0[%c3] : memref<16xi32, #tpu.memory_space<smem>>
    %13 = arith.index_cast %12 : i32 to index
    %c0_9 = arith.constant 0 : index
    %14 = vector.load %arg1[%13, %c0_9] : memref<1024x64xf32, #tpu.memory_space<vmem>>, vector<1x64xf32>
    %c3_10 = arith.constant 3 : index
    %c0_11 = arith.constant 0 : index
    %15 = vector.load %arg8[%c3_10, %c0_11] : memref<16x64xf32, #tpu.memory_space<vmem>>, vector<1x64xf32>
    tpu.vector_store %arg8[%c3_10, %c0_11], %14 {strides = array<i32>} : memref<16x64xf32, #tpu.memory_space<vmem>>, vector<1x64xf32>,
    %c4 = arith.constant 4 : index
    %16 = memref.load %arg0[%c4] : memref<16xi32, #tpu.memory_space<smem>>
    %17 = arith.index_cast %16 : i32 to index
    %c0_12 = arith.constant 0 : index
    %18 = vector.load %arg1[%17, %c0_12] : memref<1024x64xf32, #tpu.memory_space<vmem>>, vector<1x64xf32>
    %c4_13 = arith.constant 4 : index
    %c0_14 = arith.constant 0 : index
    %19 = vector.load %arg8[%c4_13, %c0_14] : memref<16x64xf32, #tpu.memory_space<vmem>>, vector<1x64xf32>
    tpu.vector_store %arg8[%c4_13, %c0_14], %18 {strides = array<i32>} : memref<16x64xf32, #tpu.memory_space<vmem>>, vector<1x64xf32>,
    %c5 = arith.constant 5 : index
    %20 = memref.load %arg0[%c5] : memref<16xi32, #tpu.memory_space<smem>>
    %21 = arith.index_cast %20 : i32 to index
    %c0_15 = arith.constant 0 : index
    %22 = vector.load %arg1[%21, %c0_15] : memref<1024x64xf32, #tpu.memory_space<vmem>>, vector<1x64xf32>
    %c5_16 = arith.constant 5 : index
    %c0_17 = arith.constant 0 : index
    %23 = vector.load %arg8[%c5_16, %c0_17] : memref<16x64xf32, #tpu.memory_space<vmem>>, vector<1x64xf32>
    tpu.vector_store %arg8[%c5_16, %c0_17], %22 {strides = array<i32>} : memref<16x64xf32, #tpu.memory_space<vmem>>, vector<1x64xf32>,
    %c6 = arith.constant 6 : index
    %24 = memref.load %arg0[%c6] : memref<16xi32, #tpu.memory_space<smem>>
    %25 = arith.index_cast %24 : i32 to index
    %c0_18 = arith.constant 0 : index
    %26 = vector.load %arg1[%25, %c0_18] : memref<1024x64xf32, #tpu.memory_space<vmem>>, vector<1x64xf32>
    %c6_19 = arith.constant 6 : index
    %c0_20 = arith.constant 0 : index
    %27 = vector.load %arg8[%c6_19, %c0_20] : memref<16x64xf32, #tpu.memory_space<vmem>>, vector<1x64xf32>
    tpu.vector_store %arg8[%c6_19, %c0_20], %26 {strides = array<i32>} : memref<16x64xf32, #tpu.memory_space<vmem>>, vector<1x64xf32>,
    %c7 = arith.constant 7 : index
    %28 = memref.load %arg0[%c7] : memref<16xi32, #tpu.memory_space<smem>>
    %29 = arith.index_cast %28 : i32 to index
    %c0_21 = arith.constant 0 : index
    %30 = vector.load %arg1[%29, %c0_21] : memref<1024x64xf32, #tpu.memory_space<vmem>>, vector<1x64xf32>
    %c7_22 = arith.constant 7 : index
    %c0_23 = arith.constant 0 : index
    %31 = vector.load %arg8[%c7_22, %c0_23] : memref<16x64xf32, #tpu.memory_space<vmem>>, vector<1x64xf32>
    tpu.vector_store %arg8[%c7_22, %c0_23], %30 {strides = array<i32>} : memref<16x64xf32, #tpu.memory_space<vmem>>, vector<1x64xf32>,
    %c8 = arith.constant 8 : index
    %32 = memref.load %arg0[%c8] : memref<16xi32, #tpu.memory_space<smem>>
    %33 = arith.index_cast %32 : i32 to index
    %c0_24 = arith.constant 0 : index
    %34 = vector.load %arg1[%33, %c0_24] : memref<1024x64xf32, #tpu.memory_space<vmem>>, vector<1x64xf32>
    %c8_25 = arith.constant 8 : index
    %c0_26 = arith.constant 0 : index
    %35 = vector.load %arg8[%c8_25, %c0_26] : memref<16x64xf32, #tpu.memory_space<vmem>>, vector<1x64xf32>
    tpu.vector_store %arg8[%c8_25, %c0_26], %34 {strides = array<i32>} : memref<16x64xf32, #tpu.memory_space<vmem>>, vector<1x64xf32>,
    %c9 = arith.constant 9 : index
    %36 = memref.load %arg0[%c9] : memref<16xi32, #tpu.memory_space<smem>>
    %37 = arith.index_cast %36 : i32 to index
    %c0_27 = arith.constant 0 : index
    %38 = vector.load %arg1[%37, %c0_27] : memref<1024x64xf32, #tpu.memory_space<vmem>>, vector<1x64xf32>
    %c9_28 = arith.constant 9 : index
    %c0_29 = arith.constant 0 : index
    %39 = vector.load %arg8[%c9_28, %c0_29] : memref<16x64xf32, #tpu.memory_space<vmem>>, vector<1x64xf32>
    tpu.vector_store %arg8[%c9_28, %c0_29], %38 {strides = array<i32>} : memref<16x64xf32, #tpu.memory_space<vmem>>, vector<1x64xf32>,
    %c10 = arith.constant 10 : index
    %40 = memref.load %arg0[%c10] : memref<16xi32, #tpu.memory_space<smem>>
    %41 = arith.index_cast %40 : i32 to index
    %c0_30 = arith.constant 0 : index
    %42 = vector.load %arg1[%41, %c0_30] : memref<1024x64xf32, #tpu.memory_space<vmem>>, vector<1x64xf32>
    %c10_31 = arith.constant 10 : index
    %c0_32 = arith.constant 0 : index
    %43 = vector.load %arg8[%c10_31, %c0_32] : memref<16x64xf32, #tpu.memory_space<vmem>>, vector<1x64xf32>
    tpu.vector_store %arg8[%c10_31, %c0_32], %42 {strides = array<i32>} : memref<16x64xf32, #tpu.memory_space<vmem>>, vector<1x64xf32>,
    %c11 = arith.constant 11 : index
    %44 = memref.load %arg0[%c11] : memref<16xi32, #tpu.memory_space<smem>>
    %45 = arith.index_cast %44 : i32 to index
    %c0_33 = arith.constant 0 : index
    %46 = vector.load %arg1[%45, %c0_33] : memref<1024x64xf32, #tpu.memory_space<vmem>>, vector<1x64xf32>
    %c11_34 = arith.constant 11 : index
    %c0_35 = arith.constant 0 : index
    %47 = vector.load %arg8[%c11_34, %c0_35] : memref<16x64xf32, #tpu.memory_space<vmem>>, vector<1x64xf32>
    tpu.vector_store %arg8[%c11_34, %c0_35], %46 {strides = array<i32>} : memref<16x64xf32, #tpu.memory_space<vmem>>, vector<1x64xf32>,
    %c12 = arith.constant 12 : index
    %48 = memref.load %arg0[%c12] : memref<16xi32, #tpu.memory_space<smem>>
    %49 = arith.index_cast %48 : i32 to index
    %c0_36 = arith.constant 0 : index
    %50 = vector.load %arg1[%49, %c0_36] : memref<1024x64xf32, #tpu.memory_space<vmem>>, vector<1x64xf32>
    %c12_37 = arith.constant 12 : index
    %c0_38 = arith.constant 0 : index
    %51 = vector.load %arg8[%c12_37, %c0_38] : memref<16x64xf32, #tpu.memory_space<vmem>>, vector<1x64xf32>
    tpu.vector_store %arg8[%c12_37, %c0_38], %50 {strides = array<i32>} : memref<16x64xf32, #tpu.memory_space<vmem>>, vector<1x64xf32>,
    %c13 = arith.constant 13 : index
    %52 = memref.load %arg0[%c13] : memref<16xi32, #tpu.memory_space<smem>>
    %53 = arith.index_cast %52 : i32 to index
    %c0_39 = arith.constant 0 : index
    %54 = vector.load %arg1[%53, %c0_39] : memref<1024x64xf32, #tpu.memory_space<vmem>>, vector<1x64xf32>
    %c13_40 = arith.constant 13 : index
    %c0_41 = arith.constant 0 : index
    %55 = vector.load %arg8[%c13_40, %c0_41] : memref<16x64xf32, #tpu.memory_space<vmem>>, vector<1x64xf32>
    tpu.vector_store %arg8[%c13_40, %c0_41], %54 {strides = array<i32>} : memref<16x64xf32, #tpu.memory_space<vmem>>, vector<1x64xf32>,
    %c14 = arith.constant 14 : index
    %56 = memref.load %arg0[%c14] : memref<16xi32, #tpu.memory_space<smem>>
    %57 = arith.index_cast %56 : i32 to index
    %c0_42 = arith.constant 0 : index
    %58 = vector.load %arg1[%57, %c0_42] : memref<1024x64xf32, #tpu.memory_space<vmem>>, vector<1x64xf32>
    %c14_43 = arith.constant 14 : index
    %c0_44 = arith.constant 0 : index
    %59 = vector.load %arg8[%c14_43, %c0_44] : memref<16x64xf32, #tpu.memory_space<vmem>>, vector<1x64xf32>
    tpu.vector_store %arg8[%c14_43, %c0_44], %58 {strides = array<i32>} : memref<16x64xf32, #tpu.memory_space<vmem>>, vector<1x64xf32>,
    %c15 = arith.constant 15 : index
    %60 = memref.load %arg0[%c15] : memref<16xi32, #tpu.memory_space<smem>>
    %61 = arith.index_cast %60 : i32 to index
    %c0_45 = arith.constant 0 : index
    %62 = vector.load %arg1[%61, %c0_45] : memref<1024x64xf32, #tpu.memory_space<vmem>>, vector<1x64xf32>
    %c15_46 = arith.constant 15 : index
    %c0_47 = arith.constant 0 : index
    %63 = vector.load %arg8[%c15_46, %c0_47] : memref<16x64xf32, #tpu.memory_space<vmem>>, vector<1x64xf32>
    tpu.vector_store %arg8[%c15_46, %c0_47], %62 {strides = array<i32>} : memref<16x64xf32, #tpu.memory_space<vmem>>, vector<1x64xf32>,
    %c0_48 = arith.constant 0 : index
    %c0_49 = arith.constant 0 : index
    %64 = vector.load %arg8[%c0_48, %c0_49] : memref<16x64xf32, #tpu.memory_space<vmem>>, vector<16x64xf32>
    %c0_50 = arith.constant 0 : index
    %c0_51 = arith.constant 0 : index
    %65 = vector.load %arg2[%c0_50, %c0_51] : memref<64x896xf32, #tpu.memory_space<vmem>>, vector<64x896xf32>
    %cst = arith.constant dense<0.000000e+00> : vector<16x896xf32>
    %66 = tpu.matmul %64, %65, %cst {dimension_numbers = #tpu.dot_dimension_numbers<[1], [0], [0], [1], [0, 0, 1, 1], [], []>} : vector<16x64xf32>, vector<64x896xf32>, vector<16x896xf32> -> vector<16x896xf32>
    %c0_52 = arith.constant 0 : index
    %c0_53 = arith.constant 0 : index
    %67 = vector.load %arg3[%c0_52, %c0_53] : memref<1x896xf32, #tpu.memory_space<vmem>>, vector<1x896xf32>
    %68 = vector.broadcast %67 : vector<1x896xf32> to vector<16x896xf32>
    %69 = arith.addf %66, %68 : vector<16x896xf32>
    %70 = vector.extract_strided_slice %69 {offsets = [0, 0], sizes = [16, 512], strides = [1, 1]} : vector<16x896xf32> to vector<16x512xf32>
    %c0_54 = arith.constant 0 : index
    %c0_55 = arith.constant 0 : index
    %71 = vector.load %arg4[%c0_54, %c0_55] : memref<128x512xf32, #tpu.memory_space<vmem>>, vector<128x512xf32>
    %cst_56 = arith.constant 0.000000e+00 : f32
    %72 = vector.broadcast %cst_56 : f32 to vector<2x128xf32>
    %cst_57 = arith.constant 0.000000e+00 : f32
    %73 = vector.broadcast %cst_57 : f32 to vector<2x128xf32>
    %74 = vector.extract_strided_slice %70 {offsets = [0, 0], sizes = [2, 512], strides = [1, 1]} : vector<16x512xf32> to vector<2x512xf32>
    %cst_58 = arith.constant dense<0.000000e+00> : vector<2x512xf32>
    %75 = tpu.matmul %72, %71, %cst_58 {dimension_numbers = #tpu.dot_dimension_numbers<[1], [0], [0], [1], [0, 0, 1, 1], [], []>} : vector<2x128xf32>, vector<128x512xf32>, vector<2x512xf32> -> vector<2x512xf32>
    %76 = arith.addf %74, %75 : vector<2x512xf32>
    %77 = vector.extract_strided_slice %76 {offsets = [0, 0], sizes = [2, 384], strides = [1, 1]} : vector<2x512xf32> to vector<2x384xf32>
    %78 = arith.negf %77 : vector<2x384xf32>
    %79 = math.exp %78 : vector<2x384xf32>
    %cst_59 = arith.constant 1.000000e+00 : f32
    %80 = vector.broadcast %cst_59 : f32 to vector<2x384xf32>
    %81 = arith.addf %80, %79 : vector<2x384xf32>
    %82 = arith.divf %80, %81 : vector<2x384xf32>
    %83 = vector.extract_strided_slice %82 {offsets = [0, 0], sizes = [2, 128], strides = [1, 1]} : vector<2x384xf32> to vector<2x128xf32>
    %84 = vector.extract_strided_slice %82 {offsets = [0, 128], sizes = [2, 128], strides = [1, 1]} : vector<2x384xf32> to vector<2x128xf32>
    %85 = vector.extract_strided_slice %82 {offsets = [0, 256], sizes = [2, 128], strides = [1, 1]} : vector<2x384xf32> to vector<2x128xf32>
    %86 = vector.extract_strided_slice %76 {offsets = [0, 384], sizes = [2, 128], strides = [1, 1]} : vector<2x512xf32> to vector<2x128xf32>
    %87 = math.tanh %86 : vector<2x128xf32>
    %88 = arith.mulf %84, %73 : vector<2x128xf32>
    %89 = arith.mulf %83, %87 : vector<2x128xf32>
    %90 = arith.addf %88, %89 : vector<2x128xf32>
    %91 = math.tanh %90 : vector<2x128xf32>
    %92 = arith.mulf %85, %91 : vector<2x128xf32>
    %93 = vector.extract_strided_slice %70 {offsets = [2, 0], sizes = [2, 512], strides = [1, 1]} : vector<16x512xf32> to vector<2x512xf32>
    %cst_60 = arith.constant dense<0.000000e+00> : vector<2x512xf32>
    %94 = tpu.matmul %92, %71, %cst_60 {dimension_numbers = #tpu.dot_dimension_numbers<[1], [0], [0], [1], [0, 0, 1, 1], [], []>} : vector<2x128xf32>, vector<128x512xf32>, vector<2x512xf32> -> vector<2x512xf32>
    %95 = arith.addf %93, %94 : vector<2x512xf32>
    %96 = vector.extract_strided_slice %95 {offsets = [0, 0], sizes = [2, 384], strides = [1, 1]} : vector<2x512xf32> to vector<2x384xf32>
    %97 = arith.negf %96 : vector<2x384xf32>
    %98 = math.exp %97 : vector<2x384xf32>
    %cst_61 = arith.constant 1.000000e+00 : f32
    %99 = vector.broadcast %cst_61 : f32 to vector<2x384xf32>
    %100 = arith.addf %99, %98 : vector<2x384xf32>
    %101 = arith.divf %99, %100 : vector<2x384xf32>
    %102 = vector.extract_strided_slice %101 {offsets = [0, 0], sizes = [2, 128], strides = [1, 1]} : vector<2x384xf32> to vector<2x128xf32>
    %103 = vector.extract_strided_slice %101 {offsets = [0, 128], sizes = [2, 128], strides = [1, 1]} : vector<2x384xf32> to vector<2x128xf32>
    %104 = vector.extract_strided_slice %101 {offsets = [0, 256], sizes = [2, 128], strides = [1, 1]} : vector<2x384xf32> to vector<2x128xf32>
    %105 = vector.extract_strided_slice %95 {offsets = [0, 384], sizes = [2, 128], strides = [1, 1]} : vector<2x512xf32> to vector<2x128xf32>
    %106 = math.tanh %105 : vector<2x128xf32>
    %107 = arith.mulf %103, %90 : vector<2x128xf32>
    %108 = arith.mulf %102, %106 : vector<2x128xf32>
    %109 = arith.addf %107, %108 : vector<2x128xf32>
    %110 = math.tanh %109 : vector<2x128xf32>
    %111 = arith.mulf %104, %110 : vector<2x128xf32>
    %112 = vector.extract_strided_slice %70 {offsets = [4, 0], sizes = [2, 512], strides = [1, 1]} : vector<16x512xf32> to vector<2x512xf32>
    %cst_62 = arith.constant dense<0.000000e+00> : vector<2x512xf32>
    %113 = tpu.matmul %111, %71, %cst_62 {dimension_numbers = #tpu.dot_dimension_numbers<[1], [0], [0], [1], [0, 0, 1, 1], [], []>} : vector<2x128xf32>, vector<128x512xf32>, vector<2x512xf32> -> vector<2x512xf32>
    %114 = arith.addf %112, %113 : vector<2x512xf32>
    %115 = vector.extract_strided_slice %114 {offsets = [0, 0], sizes = [2, 384], strides = [1, 1]} : vector<2x512xf32> to vector<2x384xf32>
    %116 = arith.negf %115 : vector<2x384xf32>
    %117 = math.exp %116 : vector<2x384xf32>
    %cst_63 = arith.constant 1.000000e+00 : f32
    %118 = vector.broadcast %cst_63 : f32 to vector<2x384xf32>
    %119 = arith.addf %118, %117 : vector<2x384xf32>
    %120 = arith.divf %118, %119 : vector<2x384xf32>
    %121 = vector.extract_strided_slice %120 {offsets = [0, 0], sizes = [2, 128], strides = [1, 1]} : vector<2x384xf32> to vector<2x128xf32>
    %122 = vector.extract_strided_slice %120 {offsets = [0, 128], sizes = [2, 128], strides = [1, 1]} : vector<2x384xf32> to vector<2x128xf32>
    %123 = vector.extract_strided_slice %120 {offsets = [0, 256], sizes = [2, 128], strides = [1, 1]} : vector<2x384xf32> to vector<2x128xf32>
    %124 = vector.extract_strided_slice %114 {offsets = [0, 384], sizes = [2, 128], strides = [1, 1]} : vector<2x512xf32> to vector<2x128xf32>
    %125 = math.tanh %124 : vector<2x128xf32>
    %126 = arith.mulf %122, %109 : vector<2x128xf32>
    %127 = arith.mulf %121, %125 : vector<2x128xf32>
    %128 = arith.addf %126, %127 : vector<2x128xf32>
    %129 = math.tanh %128 : vector<2x128xf32>
    %130 = arith.mulf %123, %129 : vector<2x128xf32>
    %131 = vector.extract_strided_slice %70 {offsets = [6, 0], sizes = [2, 512], strides = [1, 1]} : vector<16x512xf32> to vector<2x512xf32>
    %cst_64 = arith.constant dense<0.000000e+00> : vector<2x512xf32>
    %132 = tpu.matmul %130, %71, %cst_64 {dimension_numbers = #tpu.dot_dimension_numbers<[1], [0], [0], [1], [0, 0, 1, 1], [], []>} : vector<2x128xf32>, vector<128x512xf32>, vector<2x512xf32> -> vector<2x512xf32>
    %133 = arith.addf %131, %132 : vector<2x512xf32>
    %134 = vector.extract_strided_slice %133 {offsets = [0, 0], sizes = [2, 384], strides = [1, 1]} : vector<2x512xf32> to vector<2x384xf32>
    %135 = arith.negf %134 : vector<2x384xf32>
    %136 = math.exp %135 : vector<2x384xf32>
    %cst_65 = arith.constant 1.000000e+00 : f32
    %137 = vector.broadcast %cst_65 : f32 to vector<2x384xf32>
    %138 = arith.addf %137, %136 : vector<2x384xf32>
    %139 = arith.divf %137, %138 : vector<2x384xf32>
    %140 = vector.extract_strided_slice %139 {offsets = [0, 0], sizes = [2, 128], strides = [1, 1]} : vector<2x384xf32> to vector<2x128xf32>
    %141 = vector.extract_strided_slice %139 {offsets = [0, 128], sizes = [2, 128], strides = [1, 1]} : vector<2x384xf32> to vector<2x128xf32>
    %142 = vector.extract_strided_slice %139 {offsets = [0, 256], sizes = [2, 128], strides = [1, 1]} : vector<2x384xf32> to vector<2x128xf32>
    %143 = vector.extract_strided_slice %133 {offsets = [0, 384], sizes = [2, 128], strides = [1, 1]} : vector<2x512xf32> to vector<2x128xf32>
    %144 = math.tanh %143 : vector<2x128xf32>
    %145 = arith.mulf %141, %128 : vector<2x128xf32>
    %146 = arith.mulf %140, %144 : vector<2x128xf32>
    %147 = arith.addf %145, %146 : vector<2x128xf32>
    %148 = math.tanh %147 : vector<2x128xf32>
    %149 = arith.mulf %142, %148 : vector<2x128xf32>
    %150 = vector.extract_strided_slice %70 {offsets = [8, 0], sizes = [2, 512], strides = [1, 1]} : vector<16x512xf32> to vector<2x512xf32>
    %cst_66 = arith.constant dense<0.000000e+00> : vector<2x512xf32>
    %151 = tpu.matmul %149, %71, %cst_66 {dimension_numbers = #tpu.dot_dimension_numbers<[1], [0], [0], [1], [0, 0, 1, 1], [], []>} : vector<2x128xf32>, vector<128x512xf32>, vector<2x512xf32> -> vector<2x512xf32>
    %152 = arith.addf %150, %151 : vector<2x512xf32>
    %153 = vector.extract_strided_slice %152 {offsets = [0, 0], sizes = [2, 384], strides = [1, 1]} : vector<2x512xf32> to vector<2x384xf32>
    %154 = arith.negf %153 : vector<2x384xf32>
    %155 = math.exp %154 : vector<2x384xf32>
    %cst_67 = arith.constant 1.000000e+00 : f32
    %156 = vector.broadcast %cst_67 : f32 to vector<2x384xf32>
    %157 = arith.addf %156, %155 : vector<2x384xf32>
    %158 = arith.divf %156, %157 : vector<2x384xf32>
    %159 = vector.extract_strided_slice %158 {offsets = [0, 0], sizes = [2, 128], strides = [1, 1]} : vector<2x384xf32> to vector<2x128xf32>
    %160 = vector.extract_strided_slice %158 {offsets = [0, 128], sizes = [2, 128], strides = [1, 1]} : vector<2x384xf32> to vector<2x128xf32>
    %161 = vector.extract_strided_slice %158 {offsets = [0, 256], sizes = [2, 128], strides = [1, 1]} : vector<2x384xf32> to vector<2x128xf32>
    %162 = vector.extract_strided_slice %152 {offsets = [0, 384], sizes = [2, 128], strides = [1, 1]} : vector<2x512xf32> to vector<2x128xf32>
    %163 = math.tanh %162 : vector<2x128xf32>
    %164 = arith.mulf %160, %147 : vector<2x128xf32>
    %165 = arith.mulf %159, %163 : vector<2x128xf32>
    %166 = arith.addf %164, %165 : vector<2x128xf32>
    %167 = math.tanh %166 : vector<2x128xf32>
    %168 = arith.mulf %161, %167 : vector<2x128xf32>
    %169 = vector.extract_strided_slice %70 {offsets = [10, 0], sizes = [2, 512], strides = [1, 1]} : vector<16x512xf32> to vector<2x512xf32>
    %cst_68 = arith.constant dense<0.000000e+00> : vector<2x512xf32>
    %170 = tpu.matmul %168, %71, %cst_68 {dimension_numbers = #tpu.dot_dimension_numbers<[1], [0], [0], [1], [0, 0, 1, 1], [], []>} : vector<2x128xf32>, vector<128x512xf32>, vector<2x512xf32> -> vector<2x512xf32>
    %171 = arith.addf %169, %170 : vector<2x512xf32>
    %172 = vector.extract_strided_slice %171 {offsets = [0, 0], sizes = [2, 384], strides = [1, 1]} : vector<2x512xf32> to vector<2x384xf32>
    %173 = arith.negf %172 : vector<2x384xf32>
    %174 = math.exp %173 : vector<2x384xf32>
    %cst_69 = arith.constant 1.000000e+00 : f32
    %175 = vector.broadcast %cst_69 : f32 to vector<2x384xf32>
    %176 = arith.addf %175, %174 : vector<2x384xf32>
    %177 = arith.divf %175, %176 : vector<2x384xf32>
    %178 = vector.extract_strided_slice %177 {offsets = [0, 0], sizes = [2, 128], strides = [1, 1]} : vector<2x384xf32> to vector<2x128xf32>
    %179 = vector.extract_strided_slice %177 {offsets = [0, 128], sizes = [2, 128], strides = [1, 1]} : vector<2x384xf32> to vector<2x128xf32>
    %180 = vector.extract_strided_slice %177 {offsets = [0, 256], sizes = [2, 128], strides = [1, 1]} : vector<2x384xf32> to vector<2x128xf32>
    %181 = vector.extract_strided_slice %171 {offsets = [0, 384], sizes = [2, 128], strides = [1, 1]} : vector<2x512xf32> to vector<2x128xf32>
    %182 = math.tanh %181 : vector<2x128xf32>
    %183 = arith.mulf %179, %166 : vector<2x128xf32>
    %184 = arith.mulf %178, %182 : vector<2x128xf32>
    %185 = arith.addf %183, %184 : vector<2x128xf32>
    %186 = math.tanh %185 : vector<2x128xf32>
    %187 = arith.mulf %180, %186 : vector<2x128xf32>
    %188 = vector.extract_strided_slice %70 {offsets = [12, 0], sizes = [2, 512], strides = [1, 1]} : vector<16x512xf32> to vector<2x512xf32>
    %cst_70 = arith.constant dense<0.000000e+00> : vector<2x512xf32>
    %189 = tpu.matmul %187, %71, %cst_70 {dimension_numbers = #tpu.dot_dimension_numbers<[1], [0], [0], [1], [0, 0, 1, 1], [], []>} : vector<2x128xf32>, vector<128x512xf32>, vector<2x512xf32> -> vector<2x512xf32>
    %190 = arith.addf %188, %189 : vector<2x512xf32>
    %191 = vector.extract_strided_slice %190 {offsets = [0, 0], sizes = [2, 384], strides = [1, 1]} : vector<2x512xf32> to vector<2x384xf32>
    %192 = arith.negf %191 : vector<2x384xf32>
    %193 = math.exp %192 : vector<2x384xf32>
    %cst_71 = arith.constant 1.000000e+00 : f32
    %194 = vector.broadcast %cst_71 : f32 to vector<2x384xf32>
    %195 = arith.addf %194, %193 : vector<2x384xf32>
    %196 = arith.divf %194, %195 : vector<2x384xf32>
    %197 = vector.extract_strided_slice %196 {offsets = [0, 0], sizes = [2, 128], strides = [1, 1]} : vector<2x384xf32> to vector<2x128xf32>
    %198 = vector.extract_strided_slice %196 {offsets = [0, 128], sizes = [2, 128], strides = [1, 1]} : vector<2x384xf32> to vector<2x128xf32>
    %199 = vector.extract_strided_slice %196 {offsets = [0, 256], sizes = [2, 128], strides = [1, 1]} : vector<2x384xf32> to vector<2x128xf32>
    %200 = vector.extract_strided_slice %190 {offsets = [0, 384], sizes = [2, 128], strides = [1, 1]} : vector<2x512xf32> to vector<2x128xf32>
    %201 = math.tanh %200 : vector<2x128xf32>
    %202 = arith.mulf %198, %185 : vector<2x128xf32>
    %203 = arith.mulf %197, %201 : vector<2x128xf32>
    %204 = arith.addf %202, %203 : vector<2x128xf32>
    %205 = math.tanh %204 : vector<2x128xf32>
    %206 = arith.mulf %199, %205 : vector<2x128xf32>
    %207 = vector.extract_strided_slice %70 {offsets = [14, 0], sizes = [2, 512], strides = [1, 1]} : vector<16x512xf32> to vector<2x512xf32>
    %cst_72 = arith.constant dense<0.000000e+00> : vector<2x512xf32>
    %208 = tpu.matmul %206, %71, %cst_72 {dimension_numbers = #tpu.dot_dimension_numbers<[1], [0], [0], [1], [0, 0, 1, 1], [], []>} : vector<2x128xf32>, vector<128x512xf32>, vector<2x512xf32> -> vector<2x512xf32>
    %209 = arith.addf %207, %208 : vector<2x512xf32>
    %210 = vector.extract_strided_slice %209 {offsets = [0, 0], sizes = [2, 384], strides = [1, 1]} : vector<2x512xf32> to vector<2x384xf32>
    %211 = arith.negf %210 : vector<2x384xf32>
    %212 = math.exp %211 : vector<2x384xf32>
    %cst_73 = arith.constant 1.000000e+00 : f32
    %213 = vector.broadcast %cst_73 : f32 to vector<2x384xf32>
    %214 = arith.addf %213, %212 : vector<2x384xf32>
    %215 = arith.divf %213, %214 : vector<2x384xf32>
    %216 = vector.extract_strided_slice %215 {offsets = [0, 0], sizes = [2, 128], strides = [1, 1]} : vector<2x384xf32> to vector<2x128xf32>
    %217 = vector.extract_strided_slice %215 {offsets = [0, 128], sizes = [2, 128], strides = [1, 1]} : vector<2x384xf32> to vector<2x128xf32>
    %218 = vector.extract_strided_slice %215 {offsets = [0, 256], sizes = [2, 128], strides = [1, 1]} : vector<2x384xf32> to vector<2x128xf32>
    %219 = vector.extract_strided_slice %209 {offsets = [0, 384], sizes = [2, 128], strides = [1, 1]} : vector<2x512xf32> to vector<2x128xf32>
    %220 = math.tanh %219 : vector<2x128xf32>
    %221 = arith.mulf %217, %204 : vector<2x128xf32>
    %222 = arith.mulf %216, %220 : vector<2x128xf32>
    %223 = arith.addf %221, %222 : vector<2x128xf32>
    %224 = math.tanh %223 : vector<2x128xf32>
    %225 = arith.mulf %218, %224 : vector<2x128xf32>
    %226 = vector.extract_strided_slice %69 {offsets = [14, 512], sizes = [2, 384], strides = [1, 1]} : vector<16x896xf32> to vector<2x384xf32>
    %227 = vector.extract_strided_slice %226 {offsets = [0, 0], sizes = [2, 256], strides = [1, 1]} : vector<2x384xf32> to vector<2x256xf32>
    %228 = arith.negf %227 : vector<2x256xf32>
    %229 = math.exp %228 : vector<2x256xf32>
    %cst_74 = arith.constant 1.000000e+00 : f32
    %230 = vector.broadcast %cst_74 : f32 to vector<2x256xf32>
    %231 = arith.addf %230, %229 : vector<2x256xf32>
    %232 = arith.divf %230, %231 : vector<2x256xf32>
    %233 = vector.extract_strided_slice %232 {offsets = [0, 0], sizes = [2, 128], strides = [1, 1]} : vector<2x256xf32> to vector<2x128xf32>
    %234 = vector.extract_strided_slice %232 {offsets = [0, 128], sizes = [2, 128], strides = [1, 1]} : vector<2x256xf32> to vector<2x128xf32>
    %235 = vector.extract_strided_slice %226 {offsets = [0, 256], sizes = [2, 128], strides = [1, 1]} : vector<2x384xf32> to vector<2x128xf32>
    %236 = math.tanh %235 : vector<2x128xf32>
    %237 = arith.mulf %233, %236 : vector<2x128xf32>
    %238 = math.tanh %237 : vector<2x128xf32>
    %239 = arith.mulf %234, %238 : vector<2x128xf32>
    %240 = tpu.concatenate %225, %239 in 1 : vector<2x128xf32>, vector<2x128xf32> -> vector<2x256xf32>
    %cst_75 = arith.constant 0.000000e+00 : f32
    %241 = vector.broadcast %cst_75 : f32 to vector<2x256xf32>
    %242 = arith.maximumf %240, %241 : vector<2x256xf32>
    %c0_76 = arith.constant 0 : index
    %c0_77 = arith.constant 0 : index
    %243 = vector.load %arg5[%c0_76, %c0_77] : memref<256x2xf32, #tpu.memory_space<vmem>>, vector<256x2xf32>
    %cst_78 = arith.constant dense<0.000000e+00> : vector<2x2xf32>
    %244 = tpu.matmul %242, %243, %cst_78 {dimension_numbers = #tpu.dot_dimension_numbers<[1], [0], [0], [1], [0, 0, 1, 1], [], []>} : vector<2x256xf32>, vector<256x2xf32>, vector<2x2xf32> -> vector<2x2xf32>
    %c0_79 = arith.constant 0 : index
    %c0_80 = arith.constant 0 : index
    %245 = vector.load %arg6[%c0_79, %c0_80] : memref<1x2xf32, #tpu.memory_space<vmem>>, vector<1x2xf32>
    %246 = vector.broadcast %245 : vector<1x2xf32> to vector<2x2xf32>
    %247 = arith.addf %244, %246 : vector<2x2xf32>
    %c0_81 = arith.constant 0 : index
    %c0_82 = arith.constant 0 : index
    %248 = vector.load %arg7[%c0_81, %c0_82] : memref<2x2xf32, #tpu.memory_space<vmem>>, vector<2x2xf32>
    tpu.vector_store %arg7[%c0_81, %c0_82], %247 {strides = array<i32>} : memref<2x2xf32, #tpu.memory_space<vmem>>, vector<2x2xf32>,
    return
  }
}

</mosaic_0001>

<bundles_post_ra>
// kernel: tpu_custom_call.1
= control target key start
LH: loop header
LB: loop body
LE: loop exit
PB: predicated region body
PF: predicated region fallthrough
CT: control target
= control target key end

     0   :  { %12 = vsyncpa [#allocation5], 0  ;;  %s4186_s0 = inlined_call_operand.vmem [shape: s32[16], index: 0, kind: input, shape index: {}]   ;;  %s4187_s1 = inlined_call_operand.vmem [shape: f32[1024,64], index: 1, kind: input, shape index: {}]   ;;  %s4188_s2 = inlined_call_operand.vmem [shape: f32[64,896], index: 2, kind: input, shape index: {}]   ;;  %s4189_s3 = inlined_call_operand.vmem [shape: f32[1,896], index: 3, kind: input, shape index: {}]   ;;  %s4190_s4 = inlined_call_operand.vmem [shape: f32[128,512], index: 4, kind: input, shape index: {}]   ;;  %s4191_s5 = inlined_call_operand.vmem [shape: f32[256,2], index: 5, kind: input, shape index: {}]   ;;  %s4192_s6 = inlined_call_operand.vmem [shape: f32[1,2], index: 6, kind: input, shape index: {}]   ;;  %s4193_s7 = inlined_call_operand.hbm [shape: f32[2,2], index: 7, kind: output, shape index: {}]  }
   0x1   :  { %13 = vsyncpa [#allocation4], 0  ;;  %s20_s26 = sshll.u32 %s4186_s0, 4  ;;  %s21_s26 = int_to_ptr.vmem [resolvable:$true] %s20_s26 }
   0x2   :  { %s3073_s27 = scalar_lea.vmem %s21_s26, 16  ;;  %p3078_p1 = scmp.lt.s32.totalorder %s21_s26, %s21_s26 }
   0x3   :  { %p3074_p0 = scmp.ne.s32.totalorder %s21_s26, %s3073_s27  ;;  %p3079_p2 = scmp.lt.s32.totalorder %s3073_s27, %s3073_s27 }
   0x5   :  { %p3080_p3 = por %p3079_p2, %p3078_p1 }
   0x7   :  { %p3081_p4 = pnand %p3080_p3, %p3074_p0 }
   0x9   :  { %3084 = shalt.err (!%p3081_p4)
}
   0xa   :  { %s3111_s28 = smov [#allocation3]  }
   0xb   :  { %23 = dma.vmem_to_smem %s21_s26, 16, %s3111_s28, [#allocation5]  }
   0xc   :  { %3107 = dma.done.wait [#allocation5], 16  }
   0xd   :  { %3108 = vsyncadd [#allocation5], 4294967280 }
   0xe   :  { %39 = sfence }
   0xf   :  { %v108_v0 = vld [vmem:[%s4188_s2 + $0x8] sm:$0xff]  ;;  %v115_v1 = vld [vmem:[%s4188_s2 + $0x40] sm:$0xff]  ;;  %s3166_s11 = sld [smem:[#allocation3]]  ;;  %v114_v6 = vld [vmem:[%s4188_s2 + $0x38] sm:$0xff]  ;;  %v3112_v7 = vmov 0.0   ;;  %s3178_s18 = sld [smem:[#allocation3 + $0x1]] }
  0x10   :  { %v112_v2 = vld [vmem:[%s4188_s2 + $0x28] sm:$0xff]  ;;  %v2322_v3 = vpack.c.bf16 %v115_v1, %v108_v0  ;;  %v119_v4 = vld [vmem:[%s4188_s2 + $0x60] sm:$0xff]  ;;  %271 = vmatprep.mubr.f32.mxu1 %v3112_v7  ;;  %425 = vmatprep.mubr.f32.mxu0 %v3112_v7  ;;  %v118_v11 = vld [vmem:[%s4188_s2 + $0x58] sm:$0xff]  ;;  %s3190_s25 = sld [smem:[#allocation3 + $0x2]]  ;;  %s3201_s9 = sld [smem:[#allocation3 + $0x3]]  ;;  %vm43_vm0 = vcmask 516096  }
  0x11   :  { %v107_v5 = vld [vmem:[%s4188_s2] sm:$0xff]  ;;  %v2354_v8 = vpack.c.bf16 %v119_v4, %v112_v2  ;;  %v122_v12 = vld [vmem:[%s4188_s2 + $0x78] sm:$0xff]  ;;  %v129_v14 = vld [vmem:[%s4188_s2 + $0xb0] sm:$0xff]  ;;  %s3212_s16 = sld [smem:[#allocation3 + $0x4]]  ;;  %s3223_s24 = sld [smem:[#allocation3 + $0x5]]  ;;  %vm200_vm1 = vcmask 523264  }
  0x12   :  { %v2324_v9 = vpack.c.bf16 %v114_v6, %v107_v5  ;;  %v111_v10 = vld [vmem:[%s4188_s2 + $0x20] sm:$0xff]  ;;  %2323 = vmatprep.subr.bf16.mxu1 %v2322_v3  ;;  %v126_v15 = vld [vmem:[%s4188_s2 + $0x98] sm:$0xff]  ;;  %v133_v16 = vld [vmem:[%s4188_s2 + $0xd0] sm:$0xff]  ;;  %v2326_v17 = vpack.c.bf16 %v129_v14, %v122_v12  ;;  %s3238_s13 = sld [smem:[#allocation3 + $0x6]]  ;;  %s3268_s15 = sld [smem:[#allocation3 + $0x8]]  ;;  %vm2175_vm2 = vcmask 9216  }
  0x13   :  { %v2356_v13 = vpack.c.bf16 %v118_v11, %v111_v10  ;;  %2355 = vmatprep.subr.bf16.mxu0 %v2354_v8  ;;  %v2358_v18 = vpack.c.bf16 %v133_v16, %v126_v15  ;;  %v121_v19 = vld [vmem:[%s4188_s2 + $0x70] sm:$0xff]  ;;  %v128_v20 = vld [vmem:[%s4188_s2 + $0xa8] sm:$0xff]  ;;  %v143_v25 = vld [vmem:[%s4188_s2 + $0x120] sm:$0xff]  ;;  %s3283_s29 = sld [smem:[#allocation3 + $0x9]]  ;;  %s3295_s20 = sld [smem:[#allocation3 + $0xa]] }
  0x14   :  { %2325 = vmatpush1.bf16.msra.mxu1 %v2324_v9  ;;  %v125_v21 = vld [vmem:[%s4188_s2 + $0x90] sm:$0xff]  ;;  %v2328_v22 = vpack.c.bf16 %v128_v20, %v121_v19  ;;  %v132_v23 = vld [vmem:[%s4188_s2 + $0xc8] sm:$0xff]  ;;  %v147_v29 = vld [vmem:[%s4188_s2 + $0x140] sm:$0xff]  ;;  %s3324_s0 = sld [smem:[#allocation3 + $0xb]]  ;;  %s3335_s17 = sld [smem:[#allocation3 + $0xd]] }
  0x15   :  { %2357 = vmatpush1.bf16.msra.mxu0 %v2356_v13  ;;  %v136_v24 = vld [vmem:[%s4188_s2 + $0xe8] sm:$0xff]  ;;  %2327 = vmatprep.subr.bf16.mxu1 %v2326_v17  ;;  %v2360_v26 = vpack.c.bf16 %v132_v23, %v125_v21  ;;  %v135_v30 = vld [vmem:[%s4188_s2 + $0xe0] sm:$0xff]  ;;  %s41_s12 = scalar_lea.vmem %s4187_s1, %s3166_s11  ;;  %v142_v32 = vld [vmem:[%s4188_s2 + $0x118] sm:$0xff]  ;;  %s46_s26 = scalar_lea.vmem %s4187_s1, %s3178_s18 }
  0x16   :  { %2359 = vmatprep.subr.bf16.mxu0 %v2358_v18  ;;  %v2330_v27 = vpack.c.bf16 %v143_v25, %v136_v24  ;;  %v140_v28 = vld [vmem:[%s4188_s2 + $0x108] sm:$0xff]  ;;  %v139_v33 = vld [vmem:[%s4188_s2 + $0x100] sm:$0xff]  ;;  %v146_v34 = vld [vmem:[%s4188_s2 + $0x138] sm:$0xff]  ;;  %s3253_s11 = sld [smem:[#allocation3 + $0x7]]  ;;  %v2332_v35 = vpack.c.bf16 %v142_v32, %v135_v30  ;;  %s50_s14 = scalar_lea.vmem %s4187_s1, %s3190_s25 }
  0x17   :  { %v2362_v31 = vpack.c.bf16 %v147_v29, %v140_v28  ;;  %v150_v36 = vld [vmem:[%s4188_s2 + $0x158] sm:$0xff]  ;;  %v157_v37 = vld [vmem:[%s4188_s2 + $0x190] sm:$0xff]  ;;  %v2364_v39 = vpack.c.bf16 %v146_v34, %v139_v33  ;;  %v156_v43 = vld [vmem:[%s4188_s2 + $0x188] sm:$0xff]  ;;  %s54_s28 = scalar_lea.vmem %s4187_s1, %s3201_s9  ;;  %s58_s19 = scalar_lea.vmem %s4187_s1, %s3212_s16 }
  0x18   :  { %2329 = vmatpush1.bf16.msra.mxu1 %v2328_v22  ;;  %v154_v38 = vld [vmem:[%s4188_s2 + $0x178] sm:$0xff]  ;;  %v2334_v40 = vpack.c.bf16 %v157_v37, %v150_v36  ;;  %v161_v41 = vld [vmem:[%s4188_s2 + $0x1b0] sm:$0xff]  ;;  %v160_v46 = vld [vmem:[%s4188_s2 + $0x1a8] sm:$0xff]  ;;  %s62_s22 = scalar_lea.vmem %s4187_s1, %s3223_s24  ;;  %s3343_s16 = sld [smem:[#allocation3 + $0xe]] }
  0x19   :  { %2361 = vmatpush1.bf16.msra.mxu0 %v2360_v26  ;;  %2331 = vmatprep.subr.bf16.mxu1 %v2330_v27  ;;  %v149_v42 = vld [vmem:[%s4188_s2 + $0x150] sm:$0xff]  ;;  %v2366_v44 = vpack.c.bf16 %v161_v41, %v154_v38  ;;  %v42_v47 = vld [vmem:[%s41_s12] sm:$0x1]  ;;  %v110_v54 = vld [vmem:[%s4188_s2 + $0x18] sm:$0xff]  ;;  %s74_s21 = scalar_lea.vmem %s4187_s1, %s3268_s15  ;;  %s3113_s15 = smov [#allocation6]  }
  0x1a   :  { %2363 = vmatprep.subr.bf16.mxu0 %v2362_v31  ;;  %v153_v45 = vld [vmem:[%s4188_s2 + $0x170] sm:$0xff]  ;;  %44 = vst.msk [vmem:[#allocation2] sm:$0x1] %vm43_vm0, %v42_v47  ;;  %v47_v48 = vld [vmem:[%s46_s26] sm:$0x1]  ;;  %v2336_v51 = vpack.c.bf16 %v156_v43, %v149_v42  ;;  %s66_s26 = scalar_lea.vmem %s4187_s1, %s3238_s13  ;;  %v511_v58 = vld [vmem:[%s4190_s4 + $0x8] sm:$0xff]  ;;  %s86_s9 = scalar_lea.vmem %s4187_s1, %s3324_s0 }
  0x1b   :  { %v51_v49 = vld [vmem:[%s50_s14] sm:$0x1]  ;;  %48 = vst.msk [vmem:[#allocation2 + $0x1] sm:$0x1] %vm43_vm0, %v47_v48  ;;  %v2368_v55 = vpack.c.bf16 %v160_v46, %v153_v45  ;;  %v117_v57 = vld [vmem:[%s4188_s2 + $0x50] sm:$0xff]  ;;  %v515_v61 = vld [vmem:[%s4190_s4 + $0x28] sm:$0xff]  ;;  %s94_s10 = scalar_lea.vmem %s4187_s1, %s3335_s17 }
  0x1c   :  { %v55_v50 = vld [vmem:[%s54_s28] sm:$0x1]  ;;  %2333 = vmatpush1.bf16.msra.mxu1 %v2332_v35  ;;  %52 = vst.msk [vmem:[#allocation2 + $0x2] sm:$0x1] %vm43_vm0, %v51_v49  ;;  %s70_s27 = scalar_lea.vmem %s4187_s1, %s3253_s11  ;;  %v2338_v60 = vpack.c.bf16 %v117_v57, %v110_v54  ;;  %s3330_s11 = sld [smem:[#allocation3 + $0xc]]  ;;  %v3333_v62 = vpack.c.bf16 %v515_v61, %v511_v58  ;;  %v109_v63 = vld [vmem:[%s4188_s2 + $0x10] sm:$0xff] }
  0x1d   :  { %56 = vst.msk [vmem:[#allocation2 + $0x3] sm:$0x1] %vm43_vm0, %v55_v50  ;;  %v59_v52 = vld [vmem:[%s58_s19] sm:$0x1]  ;;  %2365 = vmatpush1.bf16.msra.mxu0 %v2364_v39  ;;  %2335 = vmatprep.subr.bf16.mxu1 %v2334_v40  ;;  %v116_v0 = vld [vmem:[%s4188_s2 + $0x48] sm:$0xff]  ;;  %v130_v9 = vld [vmem:[%s4188_s2 + $0xb8] sm:$0xff] }
  0x1e   :  { %v63_v53 = vld [vmem:[%s62_s22] sm:$0x1]  ;;  %60 = vst.msk [vmem:[#allocation2 + $0x4] sm:$0x1] %vm43_vm0, %v59_v52  ;;  %2367 = vmatprep.subr.bf16.mxu0 %v2366_v44  ;;  %v124_v3 = vld [vmem:[%s4188_s2 + $0x88] sm:$0xff]  ;;  %v2340_v12 = vpack.c.bf16 %v116_v0, %v109_v63  ;;  %v138_v14 = vld [vmem:[%s4188_s2 + $0xf8] sm:$0xff]  ;;  %s98_s19 = scalar_lea.vmem %s4187_s1, %s3343_s16 }
  0x1f   :  { %64 = vst.msk [vmem:[#allocation2 + $0x5] sm:$0x1] %vm43_vm0, %v63_v53  ;;  %v67_v56 = vld [vmem:[%s66_s26] sm:$0x1]  ;;  %v519_v5 = vld [vmem:[%s4190_s4 + $0x48] sm:$0xff]  ;;  %s78_s26 = scalar_lea.vmem %s4187_s1, %s3283_s29  ;;  %s82_s29 = scalar_lea.vmem %s4187_s1, %s3295_s20  ;;  %v145_v15 = vld [vmem:[%s4188_s2 + $0x130] sm:$0xff] }
  0x20   :  { %68 = vst.msk [vmem:[#allocation2 + $0x6] sm:$0x1] %vm43_vm0, %v67_v56  ;;  %v71_v59 = vld [vmem:[%s70_s27] sm:$0x1]  ;;  %2337 = vmatpush1.bf16.msra.mxu1 %v2336_v51  ;;  %s3354_s27 = sld [smem:[#allocation3 + $0xf]]  ;;  %v523_v6 = vld [vmem:[%s4190_s4 + $0x68] sm:$0xff]  ;;  %v2346_v32 = vpack.c.bf16 %v145_v15, %v138_v14 }
  0x21   :  { %72 = vst.msk [vmem:[#allocation2 + $0x7] sm:$0x1] %vm43_vm0, %v71_v59  ;;  %2369 = vmatpush1.bf16.msra.mxu0 %v2368_v55  ;;  %2339 = vmatprep.subr.bf16.mxu1 %v2338_v60  ;;  %v510_v1 = vld [vmem:[%s4190_s4] sm:$0xff]  ;;  %v527_v16 = vld [vmem:[%s4190_s4 + $0x88] sm:$0xff]  ;;  %v3409_v18 = vpack.c.bf16 %v523_v6, %v519_v5  ;;  %v137_v30 = vld [vmem:[%s4188_s2 + $0xf0] sm:$0xff] }
  0x22   :  { %v514_v2 = vld [vmem:[%s4190_s4 + $0x20] sm:$0xff]  ;;  %2387 = vmatprep.subr.bf16.mxu0 %v3333_v62  ;;  %s90_s0 = scalar_lea.vmem %s4187_s1, %s3330_s11  ;;  %v531_v19 = vld [vmem:[%s4190_s4 + $0xa8] sm:$0xff]  ;;  %v158_v44 = vld [vmem:[%s4188_s2 + $0x198] sm:$0xff] }
  0x23   :  { %v131_v4 = vld [vmem:[%s4188_s2 + $0xc0] sm:$0xff]  ;;  %v3394_v13 = vpack.c.bf16 %v514_v2, %v510_v1  ;;  %v3446_v33 = vpack.c.bf16 %v531_v19, %v527_v16  ;;  %v144_v34 = vld [vmem:[%s4188_s2 + $0x128] sm:$0xff]  ;;  %v113_v48 = vld [vmem:[%s4188_s2 + $0x30] sm:$0xff] }
  0x24   :  { %v123_v8 = vld [vmem:[%s4188_s2 + $0x80] sm:$0xff]  ;;  %v2342_v17 = vpack.c.bf16 %v131_v4, %v124_v3  ;;  %v152_v37 = vld [vmem:[%s4188_s2 + $0x168] sm:$0xff]  ;;  %v2348_v41 = vpack.c.bf16 %v144_v34, %v137_v30  ;;  %v134_v61 = vld [vmem:[%s4188_s2 + $0xd8] sm:$0xff] }
  0x25   :  { %v518_v10 = vld [vmem:[%s4190_s4 + $0x40] sm:$0xff]  ;;  %v2344_v28 = vpack.c.bf16 %v130_v9, %v123_v8  ;;  %v535_v39 = vld [vmem:[%s4190_s4 + $0xc8] sm:$0xff]  ;;  %v141_v6 = vld [vmem:[%s4188_s2 + $0x110] sm:$0xff] }
  0x26   :  { %v522_v11 = vld [vmem:[%s4190_s4 + $0x60] sm:$0xff]  ;;  %v539_v40 = vld [vmem:[%s4190_s4 + $0xe8] sm:$0xff]  ;;  %v162_v19 = vld [vmem:[%s4188_s2 + $0x1b8] sm:$0xff] }
  0x27   :  { %v75_v20 = vld [vmem:[%s74_s21] sm:$0x1]  ;;  %v3437_v29 = vpack.c.bf16 %v522_v11, %v518_v10  ;;  %v3491_v49 = vpack.c.bf16 %v539_v40, %v535_v39  ;;  %v120_v50 = vld [vmem:[%s4188_s2 + $0x68] sm:$0xff]  ;;  %v517_v30 = vld [vmem:[%s4190_s4 + $0x38] sm:$0xff] }
  0x28   :  { %v79_v21 = vld [vmem:[%s78_s26] sm:$0x1]  ;;  %76 = vst.msk [vmem:[#allocation2 + $0x8] sm:$0x1] %vm43_vm0, %v75_v20  ;;  %s102_s26 = scalar_lea.vmem %s4187_s1, %s3354_s27  ;;  %v543_v51 = vld [vmem:[%s4190_s4 + $0x108] sm:$0xff]  ;;  %v2370_v56 = vpack.c.bf16 %v120_v50, %v113_v48  ;;  %v516_v34 = vld [vmem:[%s4190_s4 + $0x30] sm:$0xff] }
  0x29   :  { %v3418_v22 = vld [vmem:[#allocation2] sm:$0xff]  ;;  %80 = vst.msk [vmem:[#allocation2 + $0x9] sm:$0x1] %vm43_vm0, %v79_v21  ;;  %v547_v52 = vld [vmem:[%s4190_s4 + $0x128] sm:$0xff]  ;;  %v520_v39 = vld [vmem:[%s4190_s4 + $0x50] sm:$0xff] }
  0x2a   :  { %v83_v23 = vld [vmem:[%s82_s29] sm:$0x1]  ;;  %2223 = vmatmul.mubr.msk.f32.vlgmr.msra.gmra.mrb[0].mxu1 %vm200_vm1, %v3418_v22  ;;  %2227 = vmatmul.mubr.msk.f32.vlgmr.msra.gmra.mrb[0].mxu0 %vm200_vm1, %v3418_v22  ;;  %v3509_v57 = vpack.c.bf16 %v547_v52, %v543_v51  ;;  %v551_v63 = vld [vmem:[%s4190_s4 + $0x148] sm:$0xff]  ;;  %v524_v40 = vld [vmem:[%s4190_s4 + $0x70] sm:$0xff] }
  0x2b   :  { %v87_v24 = vld [vmem:[%s86_s9] sm:$0x1]  ;;  %84 = vst.msk [vmem:[#allocation2 + $0xa] sm:$0x1] %vm43_vm0, %v83_v23  ;;  %2341 = vmatpush1.bf16.msra.mxu1 %v2340_v12  ;;  %2389 = vmatpush1.bf16.msra.mxu0 %v3394_v13  ;;  %v555_v0 = vld [vmem:[%s4190_s4 + $0x168] sm:$0xff]  ;;  %v537_v48 = vld [vmem:[%s4190_s4 + $0xd8] sm:$0xff] }
  0x2c   :  { %88 = vst.msk [vmem:[#allocation2 + $0xb] sm:$0x1] %vm43_vm0, %v87_v24  ;;  %v91_v25 = vld [vmem:[%s90_s0] sm:$0x1]  ;;  %2343 = vmatprep.subr.bf16.mxu1 %v2342_v17  ;;  %2391 = vmatprep.subr.bf16.mxu0 %v3409_v18  ;;  %v3537_v3 = vpack.c.bf16 %v555_v0, %v551_v63  ;;  %v148_v8 = vld [vmem:[%s4188_s2 + $0x148] sm:$0xff]  ;;  %v541_v50 = vld [vmem:[%s4190_s4 + $0xf8] sm:$0xff] }
  0x2d   :  { %v95_v26 = vld [vmem:[%s94_s10] sm:$0x1]  ;;  %92 = vst.msk [vmem:[#allocation2 + $0xc] sm:$0x1] %vm43_vm0, %v91_v25  ;;  %277 = vmatprep.mubr.f32.mxu1 %v3112_v7  ;;  %429 = vmatprep.mubr.f32.mxu0 %v3112_v7  ;;  %v559_v9 = vld [vmem:[%s4190_s4 + $0x188] sm:$0xff]  ;;  %v2378_v12 = vpack.c.bf16 %v148_v8, %v141_v6  ;;  %v3673_v52 = vpack.c.bf16 %v541_v50, %v537_v48  ;;  %v548_v63 = vld [vmem:[%s4190_s4 + $0x130] sm:$0xff] }
  0x2e   :  { %v99_v27 = vld [vmem:[%s98_s19] sm:$0x1]  ;;  %96 = vst.msk [vmem:[#allocation2 + $0xd] sm:$0x1] %vm43_vm0, %v95_v26  ;;  %v563_v10 = vld [vmem:[%s4190_s4 + $0x1a8] sm:$0xff]  ;;  %v553_v0 = vld [vmem:[%s4190_s4 + $0x158] sm:$0xff] }
  0x2f   :  { %100 = vst.msk [vmem:[#allocation2 + $0xe] sm:$0x1] %vm43_vm0, %v99_v27  ;;  %v103_v31 = vld [vmem:[%s102_s26] sm:$0x1]  ;;  %2345 = vmatpush1.bf16.msra.mxu1 %v2344_v28  ;;  %2393 = vmatpush1.bf16.msra.mxu0 %v3437_v29  ;;  %v3564_v14 = vpack.c.bf16 %v563_v10, %v559_v9  ;;  %v567_v20 = vld [vmem:[%s4190_s4 + $0x1c8] sm:$0xff]  ;;  %v513_v28 = vld [vmem:[%s4190_s4 + $0x18] sm:$0xff] }
  0x30   :  { %v526_v35 = vld [vmem:[%s4190_s4 + $0x80] sm:$0xff]  ;;  %104 = vst.msk [vmem:[#allocation2 + $0xf] sm:$0x1] %vm43_vm0, %v103_v31  ;;  %2347 = vmatprep.subr.bf16.mxu1 %v2346_v32  ;;  %2395 = vmatprep.subr.bf16.mxu0 %v3446_v33  ;;  %v571_v21 = vld [vmem:[%s4190_s4 + $0x1e8] sm:$0xff]  ;;  %v3611_v32 = vpack.c.bf16 %v517_v30, %v513_v28  ;;  %v552_v6 = vld [vmem:[%s4190_s4 + $0x150] sm:$0xff]  ;;  %v165_v30 = vlaneseq }
  0x31   :  { %v530_v36 = vld [vmem:[%s4190_s4 + $0xa0] sm:$0xff]  ;;  %v3591_v25 = vpack.c.bf16 %v571_v21, %v567_v20  ;;  %v556_v8 = vld [vmem:[%s4190_s4 + $0x170] sm:$0xff]  ;;  %v561_v9 = vld [vmem:[%s4190_s4 + $0x198] sm:$0xff] }
  0x32   :  { %v159_v38 = vld [vmem:[%s4188_s2 + $0x1a0] sm:$0xff]  ;;  %v3473_v42 = vpack.c.bf16 %v530_v36, %v526_v35  ;;  %v521_v35 = vld [vmem:[%s4190_s4 + $0x58] sm:$0xff] }
  0x33   :  { %v151_v43 = vld [vmem:[%s4188_s2 + $0x160] sm:$0xff]  ;;  %v2350_v45 = vpack.c.bf16 %v159_v38, %v152_v37  ;;  %2349 = vmatpush1.bf16.msra.mxu1 %v2348_v41  ;;  %v525_v36 = vld [vmem:[%s4190_s4 + $0x78] sm:$0xff] }
  0x34   :  { %v534_v46 = vld [vmem:[%s4190_s4 + $0xc0] sm:$0xff]  ;;  %2397 = vmatpush1.bf16.msra.mxu0 %v3473_v42  ;;  %v2352_v54 = vpack.c.bf16 %v158_v44, %v151_v43  ;;  %v3629_v38 = vpack.c.bf16 %v525_v36, %v521_v35  ;;  %v529_v41 = vld [vmem:[%s4190_s4 + $0x98] sm:$0xff]  ;;  %v3648_v44 = vpack.c.bf16 %v524_v40, %v520_v39  ;;  %v166_v35 = vshrl.u32 %v165_v30, 7 }
  0x35   :  { %v538_v47 = vld [vmem:[%s4190_s4 + $0xe0] sm:$0xff]  ;;  %2351 = vmatprep.subr.bf16.mxu1 %v2350_v45  ;;  %2399 = vmatprep.subr.bf16.mxu0 %v3491_v49  ;;  %v533_v43 = vld [vmem:[%s4190_s4 + $0xb8] sm:$0xff] }
  0x36   :  { %v3505_v55 = vpack.c.bf16 %v538_v47, %v534_v46  ;;  %v542_v58 = vld [vmem:[%s4190_s4 + $0x100] sm:$0xff]  ;;  %v3652_v45 = vpack.c.bf16 %v533_v43, %v529_v41  ;;  %v528_v46 = vld [vmem:[%s4190_s4 + $0x90] sm:$0xff]  ;;  %v565_v10 = vld [vmem:[%s4190_s4 + $0x1b8] sm:$0xff]  ;;  %v167_v40 = vsub.s32 0, %v166_v35  ;;  %v183_v41 = vsub.s32 4, %v166_v35 }
  0x37   :  { %v3503_v53 = vld [vmem:[#allocation2 + $0x8] sm:$0xff]  ;;  %v546_v59 = vld [vmem:[%s4190_s4 + $0x120] sm:$0xff]  ;;  %2353 = vmatpush1.bf16.msra.mxu1 %v2352_v54  ;;  %v532_v47 = vld [vmem:[%s4190_s4 + $0xb0] sm:$0xff] }
  0x38   :  { %2224 = vmatmul.mubr.msk.f32.gmra.mrb[2].mxu1 %vm200_vm1, %v3503_v53  ;;  %v127_v60 = vld [vmem:[%s4188_s2 + $0xa0] sm:$0xff]  ;;  %2228 = vmatmul.mubr.msk.f32.gmra.mrb[2].mxu0 %vm200_vm1, %v3503_v53  ;;  %v3534_v1 = vpack.c.bf16 %v546_v59, %v542_v58  ;;  %v3670_v51 = vpack.c.bf16 %v532_v47, %v528_v46  ;;  %v540_v54 = vld [vmem:[%s4190_s4 + $0xf0] sm:$0xff]  ;;  %v549_v58 = vld [vmem:[%s4190_s4 + $0x138] sm:$0xff]  ;;  %v171_v46 = vsub.s32 1, %v166_v35 }
  0x39   :  { %348 = vmatprep.mubr.f32.mxu1 %v3112_v7  ;;  %2401 = vmatpush1.bf16.msra.mxu0 %v3505_v55  ;;  %v2374_v2 = vpack.c.bf16 %v134_v61, %v127_v60  ;;  %v550_v4 = vld [vmem:[%s4190_s4 + $0x140] sm:$0xff]  ;;  %v544_v61 = vld [vmem:[%s4190_s4 + $0x110] sm:$0xff]  ;;  %v573_v20 = vld [vmem:[%s4190_s4 + $0x1f8] sm:$0xff] }
  0x3a   :  { %2371 = vmatprep.subr.bf16.mxu1 %v2370_v56  ;;  %2403 = vmatprep.subr.bf16.mxu0 %v3509_v57  ;;  %v554_v5 = vld [vmem:[%s4190_s4 + $0x160] sm:$0xff] }
  0x3b   :  { %638 = vmatprep.mubr.f32.mxu0 %v3112_v7  ;;  %v3561_v11 = vpack.c.bf16 %v554_v5, %v550_v4  ;;  %v558_v15 = vld [vmem:[%s4190_s4 + $0x180] sm:$0xff]  ;;  %v3710_v4 = vpack.c.bf16 %v548_v63, %v544_v61 }
  0x3c   :  { %2225 = vmatmul.mubr.msk.f32.vlgmr.msra.gmra.mrb[4].mxu1 %vm200_vm1, %v3418_v22  ;;  %v562_v16 = vld [vmem:[%s4190_s4 + $0x1a0] sm:$0xff] }
  0x3d   :  { %2373 = vmatpush3.bf16.msra.mxu1 %v2370_v56  ;;  %2405 = vmatpush1.bf16.msra.mxu0 %v3534_v1  ;;  %v155_v17 = vld [vmem:[%s4188_s2 + $0x180] sm:$0xff]  ;;  %v3588_v23 = vpack.c.bf16 %v562_v16, %v558_v15  ;;  %v545_v56 = vld [vmem:[%s4190_s4 + $0x118] sm:$0xff]  ;;  %v3733_v15 = vpack.c.bf16 %v565_v10, %v561_v9  ;;  %v560_v16 = vld [vmem:[%s4190_s4 + $0x190] sm:$0xff]  ;;  %v179_v10 = vsub.s32 3, %v166_v35  ;;  %s2183_s2 = sshll.u32 %s3113_s15, 4  ;;  %s2184_s2 = int_to_ptr.vmem [resolvable:$true] %s2183_s2 }
  0x3e   :  { %2375 = vmatprep.subr.bf16.mxu1 %v2374_v2  ;;  %2407 = vmatprep.subr.bf16.mxu0 %v3537_v3  ;;  %v2382_v24 = vpack.c.bf16 %v162_v19, %v155_v17  ;;  %v566_v26 = vld [vmem:[%s4190_s4 + $0x1c0] sm:$0xff]  ;;  %v3693_v60 = vpack.c.bf16 %v549_v58, %v545_v56  ;;  %v564_v17 = vld [vmem:[%s4190_s4 + $0x1b0] sm:$0xff]  ;;  %v569_v19 = vld [vmem:[%s4190_s4 + $0x1d8] sm:$0xff]  ;;  %s3085_s10 = scalar_lea.vmem %s2184_s2, 32  ;;  %p3090_p6 = scmp.lt.s32.totalorder %s2184_s2, %s2184_s2 }
  0x3f   :  { %354 = vmatprep.mubr.f32.mxu1 %v3112_v7  ;;  %v570_v27 = vld [vmem:[%s4190_s4 + $0x1e0] sm:$0xff]  ;;  %v3750_v21 = vpack.c.bf16 %v564_v17, %v560_v16  ;;  %p3086_p5 = scmp.ne.s32.totalorder %s2184_s2, %s3085_s10  ;;  %p3091_p7 = scmp.lt.s32.totalorder %s3085_s10, %s3085_s10 }
  0x40   :  { %2226 = vmatmul.mubr.msk.f32.gmra.mrb[6].mxu1 %vm200_vm1, %v3503_v53  ;;  %v3608_v31 = vpack.c.bf16 %v570_v27, %v566_v26  ;;  %v568_v26 = vld [vmem:[%s4190_s4 + $0x1d0] sm:$0xff]  ;;  %v163_v43 = vld [vmem:[%s4189_s3] sm:$0xff] }
  0x41   :  { %2377 = vmatpush3.bf16.msra.mxu1 %v2374_v2  ;;  %2409 = vmatpush1.bf16.msra.mxu0 %v3561_v11  ;;  %v557_v2 = vld [vmem:[%s4190_s4 + $0x178] sm:$0xff]  ;;  %v572_v27 = vld [vmem:[%s4190_s4 + $0x1f0] sm:$0xff]  ;;  %v168_v47 = vrot.slane %v163_v43, %v167_v40  ;;  %v184_v48 = vrot.slane %v163_v43, %v183_v41  ;;  %v172_v50 = vrot.slane %v163_v43, %v171_v46  ;;  %v191_v41 = vsub.s32 6, %v166_v35  ;;  %p3092_p8 = por %p3091_p7, %p3090_p6 }
  0x42   :  { %2379 = vmatprep.subr.bf16.mxu1 %v2378_v12  ;;  %2411 = vmatprep.subr.bf16.mxu0 %v3564_v14  ;;  %v3713_v5 = vpack.c.bf16 %v557_v2, %v553_v0  ;;  %v3764_v28 = vpack.c.bf16 %v572_v27, %v568_v26  ;;  %v187_v0 = vsub.s32 5, %v166_v35 }
  0x43   :  { %2319 = vmatprep.mubr.msk.f32.mxu1 %vm200_vm1, %v3418_v22  ;;  %v512_v22 = vld [vmem:[%s4190_s4 + $0x10] sm:$0xff]  ;;  %p3093_p9 = pnand %p3092_p8, %p3086_p5 }
  0x44   :  { %v3626_v37 = vpack.c.bf16 %v516_v34, %v512_v22  ;;  %v188_v17 = vrot.slane %v163_v43, %v187_v0 }
  0x45   :  { %2381 = vmatpush3.bf16.msra.mxu1 %v2378_v12  ;;  %2413 = vmatpush1.bf16.msra.mxu0 %v3588_v23  ;;  %v3730_v12 = vpack.c.bf16 %v556_v8, %v552_v6  ;;  %v175_v6 = vsub.s32 2, %v166_v35 }
  0x46   :  { %2383 = vmatprep.subr.bf16.mxu1 %v2382_v24  ;;  %2415 = vmatprep.subr.bf16.mxu0 %v3591_v25 }
  0x49   :  { %2385 = vmatpush3.bf16.msra.mxu1 %v2382_v24  ;;  %2417 = vmatpush1.bf16.msra.mxu0 %v3608_v31  ;;  %v3753_v24 = vpack.c.bf16 %v573_v20, %v569_v19  ;;  %v176_v19 = vrot.slane %v163_v43, %v175_v6  ;;  %v180_v20 = vrot.slane %v163_v43, %v179_v10 }
  0x4a   :  { %2419 = vmatprep.subr.bf16.mxu1 %v3611_v32  ;;  %2451 = vmatprep.subr.bf16.mxu0 %v3333_v62 }
  0x4c   :  { %2320 = vmatmul.mubr.msk.f32.vlgmr.msra.gmra.mrb[8].mxu1 %vm200_vm1, %v3503_v53  ;;  %639 = vmatmul.mubr.f32.vlgmr.msra.gmra.mrb[4].mxu0 %v3112_v7  ;;  %v536_v53 = vld [vmem:[%s4190_s4 + $0xd0] sm:$0xff] }
  0x4d   :  { %2421 = vmatpush1.bf16.msra.mxu1 %v3626_v37  ;;  %709 = vmatprep.mubr.f32.mxu1 %v3112_v7  ;;  %v3690_v59 = vpack.c.bf16 %v540_v54, %v536_v53 }
  0x4e   :  { %2423 = vmatprep.subr.bf16.mxu1 %v3629_v38  ;;  %2453 = vmatpush1.bf16.msra.mxu0 %v3394_v13 }
  0x4f   :  { %2455 = vmatprep.subr.bf16.mxu0 %v3409_v18  ;;  %808 = vmatprep.mubr.f32.mxu0 %v3112_v7 }
  0x51   :  { %2425 = vmatpush1.bf16.msra.mxu1 %v3648_v44 }
  0x52   :  { %2427 = vmatprep.subr.bf16.mxu1 %v3652_v45  ;;  %2457 = vmatpush1.bf16.msra.mxu0 %v3437_v29 }
  0x53   :  { %2459 = vmatprep.subr.bf16.mxu0 %v3446_v33 }
  0x55   :  { %2429 = vmatpush1.bf16.msra.mxu1 %v3670_v51 }
  0x56   :  { %2431 = vmatprep.subr.bf16.mxu1 %v3673_v52  ;;  %2461 = vmatpush1.bf16.msra.mxu0 %v3473_v42 }
  0x57   :  { %2463 = vmatprep.subr.bf16.mxu0 %v3491_v49 }
  0x59   :  { %2433 = vmatpush1.bf16.msra.mxu1 %v3690_v59 }
  0x5a   :  { %2435 = vmatprep.subr.bf16.mxu1 %v3693_v60  ;;  %2465 = vmatpush1.bf16.msra.mxu0 %v3505_v55 }
  0x5b   :  { %2467 = vmatprep.subr.bf16.mxu0 %v3509_v57 }
  0x5d   :  { %2437 = vmatpush1.bf16.msra.mxu1 %v3710_v4 }
  0x5e   :  { %2439 = vmatprep.subr.bf16.mxu1 %v3713_v5  ;;  %2469 = vmatpush1.bf16.msra.mxu0 %v3534_v1 }
  0x5f   :  { %2471 = vmatprep.subr.bf16.mxu0 %v3537_v3 }
  0x61   :  { %2441 = vmatpush1.bf16.msra.mxu1 %v3730_v12 }
  0x62   :  { %2443 = vmatprep.subr.bf16.mxu1 %v3733_v15  ;;  %2473 = vmatpush1.bf16.msra.mxu0 %v3561_v11 }
  0x63   :  { %2475 = vmatprep.subr.bf16.mxu0 %v3564_v14 }
  0x65   :  { %2445 = vmatpush1.bf16.msra.mxu1 %v3750_v21 }
  0x66   :  { %2447 = vmatprep.subr.bf16.mxu1 %v3753_v24  ;;  %2477 = vmatpush1.bf16.msra.mxu0 %v3588_v23 }
  0x67   :  { %2479 = vmatprep.subr.bf16.mxu0 %v3591_v25 }
  0x69   :  { %2449 = vmatpush1.bf16.msra.mxu1 %v3764_v28 }
  0x6a   :  { %2483 = vmatprep.subr.bf16.mxu1 %v3611_v32  ;;  %2481 = vmatpush1.bf16.msra.mxu0 %v3608_v31 }
  0x6b   :  { %2515 = vmatprep.subr.bf16.mxu0 %v3333_v62 }
  0x6c   :  { %710 = vmatmul.mubr.f32.vlgmr.msra.gmra.mrb[10].mxu1 %v3112_v7 }
  0x6d   :  { %2485 = vmatpush1.bf16.msra.mxu1 %v3626_v37  ;;  %879 = vmatprep.mubr.f32.mxu1 %v3112_v7 }
  0x6e   :  { %2487 = vmatprep.subr.bf16.mxu1 %v3629_v38 }
  0x71   :  { %2489 = vmatpush1.bf16.msra.mxu1 %v3648_v44 }
  0x72   :  { %2491 = vmatprep.subr.bf16.mxu1 %v3652_v45 }
  0x75   :  { %2493 = vmatpush1.bf16.msra.mxu1 %v3670_v51 }
  0x76   :  { %2495 = vmatprep.subr.bf16.mxu1 %v3673_v52 }
  0x79   :  { %2497 = vmatpush1.bf16.msra.mxu1 %v3690_v59 }
  0x7a   :  { %2499 = vmatprep.subr.bf16.mxu1 %v3693_v60 }
  0x7d   :  { %2501 = vmatpush1.bf16.msra.mxu1 %v3710_v4 }
  0x7e   :  { %2503 = vmatprep.subr.bf16.mxu1 %v3713_v5 }
  0x81   :  { %2505 = vmatpush1.bf16.msra.mxu1 %v3730_v12 }
  0x82   :  { %2507 = vmatprep.subr.bf16.mxu1 %v3733_v15 }
  0x85   :  { %2509 = vmatpush1.bf16.msra.mxu1 %v3750_v21 }
  0x86   :  { %2511 = vmatprep.subr.bf16.mxu1 %v3753_v24 }
  0x89   :  { %2513 = vmatpush1.bf16.msra.mxu1 %v3764_v28 }
  0x8a   :  { %2547 = vmatprep.subr.bf16.mxu1 %v3611_v32 }
  0xfd   :  { %v273_v22 = vpop.f32.mrb[0].mxu1  ;;  %v427_v34 = vpop.f32.mrb[0].mxu0 }
  0xfe   :  { %v275_v36 = vpop.f32.mrb[1].mxu1  ;;  %v428_v39 = vpop.f32.mrb[1].mxu0 }
  0xff   :  { %v3802_v10 = vadd.f32 %v275_v36, %v172_v50 }
 0x10b   :  { %v279_v53 = vpop.f32.mrb[2].mxu1  ;;  %v431_v61 = vpop.f32.mrb[2].mxu0 }
 0x10c   :  { %v3794_v54 = vadd.f32 %v279_v53, %v168_v47  ;;  %v281_v56 = vpop.f32.mrb[3].mxu1  ;;  %v432_v63 = vadd.f32 %v431_v61, %v184_v48  ;;  %v433_v2 = vpop.f32.mrb[3].mxu0  ;;  %v192_v53 = vrot.slane %v163_v43, %v191_v41 }
 0x10d   :  { %v3796_v58 = vadd.f32 %v281_v56, %v172_v50  ;;  %v434_v34 = vadd.f32 %v433_v2, %v188_v17 }
 0x10e   :  { %v2255_v8 = vmul.f32 -1.442695, %v432_v63 }
 0x10f   :  { %v350_v9 = vpop.f32.mrb[4].mxu1  ;;  %v2256_v40 = vmul.f32 -1.442695, %v434_v34 }
 0x110   :  { %v352_v16 = vpop.f32.mrb[5].mxu1  ;;  %2933 = vpow2.f32 %v2255_v8 }
 0x111   :  { %2935 = vpow2.f32 %v2256_v40 }
 0x113   :  { %v356_v26 = vpop.f32.mrb[6].mxu1 }
 0x114   :  { %v3798_v27 = vadd.f32 %v356_v26, %v176_v19  ;;  %v358_v30 = vpop.f32.mrb[7].mxu1  ;;  %v3804_v26 = vadd.f32 %v273_v22, %v168_v47 }
 0x115   :  { %v3800_v39 = vadd.f32 %v358_v30, %v180_v20 }
 0x11a   :  { %v2934_v46 = vpop.eup %2933 }
 0x11b   :  { %v2048_v48 = vadd.f32 1.0, %v2934_v46  ;;  %v2936_v8 = vpop.eup %2935 }
 0x11c   :  { %v2049_v17 = vadd.f32 1.0, %v2936_v8 }
 0x11d   :  { %2937 = vrcp.f32 %v2048_v48 }
 0x11f   :  { %v2321_v56 = vpop.f32.mrb[8].mxu1  ;;  %v640_v61 = vpop.f32.mrb[4].mxu0 }
 0x120   :  { %v507_v63 = vadd.f32 %v2321_v56, %v192_v53  ;;  %v502_v0 = vpop.f32.mrb[9].mxu1  ;;  %v642_v6 = vpop.f32.mrb[5].mxu0  ;;  %v716_v35 = vadd.f32 %v640_v61, %v3804_v26  ;;  %v3810_v53 = vadd.f32 %v350_v9, %v176_v19  ;;  %v3812_v61 = vadd.f32 %v352_v16, %v180_v20 }
 0x121   :  { %v717_v2 = vadd.f32 %v642_v6, %v3802_v10 }
 0x122   :  { %2939 = vtanh.f32 %v507_v63  ;;  %v2231_v41 = vmul.f32 -1.442695, %v716_v35 }
 0x123   :  { %v2232_v43 = vmul.f32 -1.442695, %v717_v2  ;;  %2941 = vrcp.f32 %v2049_v17 }
 0x127   :  { %v2938_v30 = vpop.eup %2937 }
 0x12c   :  { %v2940_v34 = vpop.eup %2939 }
 0x12d   :  { %v2055_v40 = vmul.f32 %v2940_v34, %v2938_v30  ;;  %v2942_v46 = vpop.eup %2941 }
 0x12f   :  { %2943 = vtanh.f32 %v2055_v40 }
 0x130   :  { %2945 = vpow2.f32 %v2232_v43 }
 0x131   :  { %2947 = vpow2.f32 %v2231_v41 }
 0x139   :  { %v2944_v48 = vpop.eup %2943 }
 0x13a   :  { %v2946_v36 = vpop.eup %2945  ;;  %v3808_v50 = vmul.f32 %v2944_v48, %v2942_v46 }
 0x13b   :  { %v2948_v22 = vpop.eup %2947  ;;  %v730_v47 = vadd.f32 1.0, %v2946_v36 }
 0x13c   :  { %v729_v56 = vadd.f32 1.0, %v2948_v22 }
 0x13d   :  { %2949 = vrcp.f32 %v730_v47 }
 0x13e   :  { %2951 = vrcp.f32 %v729_v56 }
 0x13f   :  { %v711_v63 = vpop.f32.mrb[10].mxu1 }
 0x140   :  { %v718_v0 = vadd.f32 %v711_v63, %v3810_v53  ;;  %v713_v6 = vpop.f32.mrb[11].mxu1 }
 0x141   :  { %v719_v8 = vadd.f32 %v713_v6, %v3812_v61 }
 0x142   :  { %v2233_v2 = vmul.f32 -1.442695, %v718_v0 }
 0x143   :  { %2953 = vtanh.f32 %v719_v8 }
 0x144   :  { %2955 = vpow2.f32 %v2233_v2 }
 0x147   :  { %v2950_v17 = vpop.eup %2949 }
 0x148   :  { %v2952_v35 = vpop.eup %2951  ;;  %v739_v9 = vmul.f32 0.0, %v2950_v17 }
 0x14d   :  { %v2954_v30 = vpop.eup %2953 }
 0x14e   :  { %v2956_v34 = vpop.eup %2955  ;;  %v740_v19 = vmul.f32 %v2954_v30, %v2952_v35 }
 0x14f   :  { %v731_v43 = vadd.f32 1.0, %v2956_v34 }
 0x150   :  { %v3816_v16 = vadd.f32 %v740_v19, %v739_v9 }
 0x151   :  { %2957 = vrcp.f32 %v731_v43 }
 0x152   :  { %2959 = vtanh.f32 %v3816_v16 }
 0x15b   :  { %v2958_v20 = vpop.eup %2957 }
 0x15c   :  { %v2960_v40 = vpop.eup %2959 }
 0x15d   :  { %v743_v41 = vmul.f32 %v2960_v40, %v2958_v20 }
 0x15f   :  { %809 = vmatmul.mubr.f32.vlgmr.msra.gmra.mrb[6].mxu0 %v743_v41  ;;  %880 = vmatmul.mubr.f32.vlgmr.msra.gmra.mrb[12].mxu1 %v743_v41 }
 0x160   :  { %2517 = vmatpush1.bf16.msra.mxu0 %v3394_v13  ;;  %2549 = vmatpush1.bf16.msra.mxu1 %v3626_v37 }
 0x161   :  { %2519 = vmatprep.subr.bf16.mxu0 %v3409_v18  ;;  %2551 = vmatprep.subr.bf16.mxu1 %v3629_v38 }
 0x162   :  { %996 = vmatprep.mubr.f32.mxu0 %v3112_v7  ;;  %1067 = vmatprep.mubr.f32.mxu1 %v3112_v7 }
 0x164   :  { %2521 = vmatpush1.bf16.msra.mxu0 %v3437_v29  ;;  %2553 = vmatpush1.bf16.msra.mxu1 %v3648_v44 }
 0x165   :  { %2523 = vmatprep.subr.bf16.mxu0 %v3446_v33  ;;  %2555 = vmatprep.subr.bf16.mxu1 %v3652_v45 }
 0x168   :  { %2525 = vmatpush1.bf16.msra.mxu0 %v3473_v42  ;;  %2557 = vmatpush1.bf16.msra.mxu1 %v3670_v51 }
 0x169   :  { %2527 = vmatprep.subr.bf16.mxu0 %v3491_v49  ;;  %2559 = vmatprep.subr.bf16.mxu1 %v3673_v52 }
 0x16c   :  { %2529 = vmatpush1.bf16.msra.mxu0 %v3505_v55  ;;  %2561 = vmatpush1.bf16.msra.mxu1 %v3690_v59 }
 0x16d   :  { %2531 = vmatprep.subr.bf16.mxu0 %v3509_v57  ;;  %2563 = vmatprep.subr.bf16.mxu1 %v3693_v60 }
 0x170   :  { %2533 = vmatpush1.bf16.msra.mxu0 %v3534_v1  ;;  %2565 = vmatpush1.bf16.msra.mxu1 %v3710_v4 }
 0x171   :  { %2535 = vmatprep.subr.bf16.mxu0 %v3537_v3  ;;  %2567 = vmatprep.subr.bf16.mxu1 %v3713_v5 }
 0x174   :  { %2537 = vmatpush1.bf16.msra.mxu0 %v3561_v11  ;;  %2569 = vmatpush1.bf16.msra.mxu1 %v3730_v12 }
 0x175   :  { %2539 = vmatprep.subr.bf16.mxu0 %v3564_v14  ;;  %2571 = vmatprep.subr.bf16.mxu1 %v3733_v15 }
 0x178   :  { %2541 = vmatpush1.bf16.msra.mxu0 %v3588_v23  ;;  %2573 = vmatpush1.bf16.msra.mxu1 %v3750_v21 }
 0x179   :  { %2543 = vmatprep.subr.bf16.mxu0 %v3591_v25  ;;  %2575 = vmatprep.subr.bf16.mxu1 %v3753_v24 }
 0x17c   :  { %2545 = vmatpush1.bf16.msra.mxu0 %v3608_v31  ;;  %2577 = vmatpush1.bf16.msra.mxu1 %v3764_v28 }
 0x17d   :  { %2579 = vmatprep.subr.bf16.mxu0 %v3333_v62  ;;  %2611 = vmatprep.subr.bf16.mxu1 %v3611_v32 }
 0x232   :  { %v810_v46 = vpop.f32.mrb[6].mxu0  ;;  %v881_v48 = vpop.f32.mrb[12].mxu1 }
 0x233   :  { %v890_v36 = vrot.slane %v810_v46, 6  ;;  %v812_v22 = vpop.f32.mrb[7].mxu0  ;;  %v883_v47 = vpop.f32.mrb[13].mxu1  ;;  %v892_v2 = vrot.slane %v881_v48, 6  ;;  %v922_v48 = vrot.slane %v3816_v16, 6 }
 0x234   :  { %v891_v56 = vrot.slane %v812_v22, 6  ;;  %v893_v17 = vrot.slane %v883_v47, 6 }
 0x235   :  { %v898_v63 = vadd.f32 %v890_v36, %v3804_v26  ;;  %v900_v35 = vadd.f32 %v892_v2, %v3810_v53 }
 0x236   :  { %v899_v0 = vadd.f32 %v891_v56, %v3802_v10  ;;  %v901_v30 = vadd.f32 %v893_v17, %v3812_v61 }
 0x237   :  { %v2234_v6 = vmul.f32 -1.442695, %v898_v63  ;;  %v2236_v34 = vmul.f32 -1.442695, %v900_v35 }
 0x238   :  { %v2235_v8 = vmul.f32 -1.442695, %v899_v0 }
 0x239   :  { %2961 = vpow2.f32 %v2234_v6 }
 0x23a   :  { %2963 = vpow2.f32 %v2235_v8 }
 0x23b   :  { %2965 = vtanh.f32 %v901_v30 }
 0x23c   :  { %2967 = vpow2.f32 %v2236_v34 }
 0x243   :  { %v2962_v9 = vpop.eup %2961 }
 0x244   :  { %v911_v19 = vadd.f32 1.0, %v2962_v9  ;;  %v2964_v43 = vpop.eup %2963 }
 0x245   :  { %v912_v20 = vadd.f32 1.0, %v2964_v43  ;;  %v2966_v40 = vpop.eup %2965 }
 0x246   :  { %2969 = vrcp.f32 %v911_v19  ;;  %v2968_v41 = vpop.eup %2967 }
 0x247   :  { %2971 = vrcp.f32 %v912_v20  ;;  %v913_v47 = vadd.f32 1.0, %v2968_v41 }
 0x249   :  { %2973 = vrcp.f32 %v913_v47 }
 0x250   :  { %v2970_v46 = vpop.eup %2969 }
 0x251   :  { %v925_v36 = vmul.f32 %v2970_v46, %v2966_v40  ;;  %v2972_v22 = vpop.eup %2971 }
 0x252   :  { %v924_v56 = vmul.f32 %v2972_v22, %v922_v48 }
 0x253   :  { %v2974_v0 = vpop.eup %2973 }
 0x254   :  { %v3858_v63 = vadd.f32 %v925_v36, %v924_v56 }
 0x256   :  { %2975 = vtanh.f32 %v3858_v63 }
 0x260   :  { %v2976_v6 = vpop.eup %2975 }
 0x261   :  { %v928_v8 = vmul.f32 %v2976_v6, %v2974_v0 }
 0x263   :  { %v930_v2 = vrot.slane %v928_v8, 2 }
 0x265   :  { %997 = vmatmul.mubr.f32.vlgmr.msra.gmra.mrb[8].mxu0 %v930_v2  ;;  %1068 = vmatmul.mubr.f32.vlgmr.msra.gmra.mrb[14].mxu1 %v930_v2 }
 0x266   :  { %2581 = vmatpush1.bf16.msra.mxu0 %v3394_v13  ;;  %2613 = vmatpush1.bf16.msra.mxu1 %v3626_v37 }
 0x267   :  { %2583 = vmatprep.subr.bf16.mxu0 %v3409_v18  ;;  %2615 = vmatprep.subr.bf16.mxu1 %v3629_v38 }
 0x268   :  { %1184 = vmatprep.mubr.f32.mxu0 %v3112_v7  ;;  %1255 = vmatprep.mubr.f32.mxu1 %v3112_v7 }
 0x26a   :  { %2585 = vmatpush1.bf16.msra.mxu0 %v3437_v29  ;;  %2617 = vmatpush1.bf16.msra.mxu1 %v3648_v44 }
 0x26b   :  { %2587 = vmatprep.subr.bf16.mxu0 %v3446_v33  ;;  %2619 = vmatprep.subr.bf16.mxu1 %v3652_v45 }
 0x26e   :  { %2589 = vmatpush1.bf16.msra.mxu0 %v3473_v42  ;;  %2621 = vmatpush1.bf16.msra.mxu1 %v3670_v51 }
 0x26f   :  { %2591 = vmatprep.subr.bf16.mxu0 %v3491_v49  ;;  %2623 = vmatprep.subr.bf16.mxu1 %v3673_v52 }
 0x272   :  { %2593 = vmatpush1.bf16.msra.mxu0 %v3505_v55  ;;  %2625 = vmatpush1.bf16.msra.mxu1 %v3690_v59 }
 0x273   :  { %2595 = vmatprep.subr.bf16.mxu0 %v3509_v57  ;;  %2627 = vmatprep.subr.bf16.mxu1 %v3693_v60 }
 0x276   :  { %2597 = vmatpush1.bf16.msra.mxu0 %v3534_v1  ;;  %2629 = vmatpush1.bf16.msra.mxu1 %v3710_v4 }
 0x277   :  { %2599 = vmatprep.subr.bf16.mxu0 %v3537_v3  ;;  %2631 = vmatprep.subr.bf16.mxu1 %v3713_v5 }
 0x27a   :  { %2601 = vmatpush1.bf16.msra.mxu0 %v3561_v11  ;;  %2633 = vmatpush1.bf16.msra.mxu1 %v3730_v12 }
 0x27b   :  { %2603 = vmatprep.subr.bf16.mxu0 %v3564_v14  ;;  %2635 = vmatprep.subr.bf16.mxu1 %v3733_v15 }
 0x27e   :  { %2605 = vmatpush1.bf16.msra.mxu0 %v3588_v23  ;;  %2637 = vmatpush1.bf16.msra.mxu1 %v3750_v21 }
 0x27f   :  { %2607 = vmatprep.subr.bf16.mxu0 %v3591_v25  ;;  %2639 = vmatprep.subr.bf16.mxu1 %v3753_v24 }
 0x282   :  { %2609 = vmatpush1.bf16.msra.mxu0 %v3608_v31  ;;  %2641 = vmatpush1.bf16.msra.mxu1 %v3764_v28 }
 0x283   :  { %2643 = vmatprep.subr.bf16.mxu0 %v3333_v62  ;;  %2675 = vmatprep.subr.bf16.mxu1 %v3611_v32 }
 0x338   :  { %v998_v16 = vpop.f32.mrb[8].mxu0  ;;  %v1069_v17 = vpop.f32.mrb[14].mxu1 }
 0x339   :  { %v1078_v35 = vrot.slane %v998_v16, 4  ;;  %v1000_v30 = vpop.f32.mrb[9].mxu0  ;;  %v1071_v34 = vpop.f32.mrb[15].mxu1  ;;  %v1080_v41 = vrot.slane %v1069_v17, 4  ;;  %v1110_v17 = vrot.slane %v3858_v63, 6 }
 0x33a   :  { %v1079_v9 = vrot.slane %v1000_v30, 4  ;;  %v1081_v46 = vrot.slane %v1071_v34, 4 }
 0x33b   :  { %v1086_v19 = vadd.f32 %v1078_v35, %v3804_v26  ;;  %v1088_v48 = vadd.f32 %v1080_v41, %v3810_v53 }
 0x33c   :  { %v1087_v43 = vadd.f32 %v1079_v9, %v3802_v10  ;;  %v1089_v36 = vadd.f32 %v1081_v46, %v3812_v61 }
 0x33d   :  { %v2237_v20 = vmul.f32 -1.442695, %v1086_v19  ;;  %v2239_v22 = vmul.f32 -1.442695, %v1088_v48 }
 0x33e   :  { %v2238_v40 = vmul.f32 -1.442695, %v1087_v43 }
 0x33f   :  { %2977 = vpow2.f32 %v2237_v20 }
 0x340   :  { %2979 = vpow2.f32 %v2238_v40 }
 0x341   :  { %2981 = vtanh.f32 %v1089_v36 }
 0x342   :  { %2983 = vpow2.f32 %v2239_v22 }
 0x349   :  { %v2978_v47 = vpop.eup %2977 }
 0x34a   :  { %v1099_v56 = vadd.f32 1.0, %v2978_v47  ;;  %v2980_v0 = vpop.eup %2979 }
 0x34b   :  { %v1100_v6 = vadd.f32 1.0, %v2980_v0  ;;  %v2982_v8 = vpop.eup %2981 }
 0x34c   :  { %2985 = vrcp.f32 %v1099_v56  ;;  %v2984_v2 = vpop.eup %2983 }
 0x34d   :  { %2987 = vrcp.f32 %v1100_v6  ;;  %v1101_v34 = vadd.f32 1.0, %v2984_v2 }
 0x34f   :  { %2989 = vrcp.f32 %v1101_v34 }
 0x356   :  { %v2986_v16 = vpop.eup %2985 }
 0x357   :  { %v1113_v35 = vmul.f32 %v2986_v16, %v2982_v8  ;;  %v2988_v30 = vpop.eup %2987 }
 0x358   :  { %v1112_v9 = vmul.f32 %v2988_v30, %v1110_v17 }
 0x359   :  { %v2990_v43 = vpop.eup %2989 }
 0x35a   :  { %v3900_v19 = vadd.f32 %v1113_v35, %v1112_v9 }
 0x35c   :  { %2991 = vtanh.f32 %v3900_v19 }
 0x366   :  { %v2992_v20 = vpop.eup %2991 }
 0x367   :  { %v1116_v40 = vmul.f32 %v2992_v20, %v2990_v43 }
 0x369   :  { %v1118_v41 = vrot.slane %v1116_v40, 4 }
 0x36b   :  { %1185 = vmatmul.mubr.f32.vlgmr.msra.gmra.mrb[10].mxu0 %v1118_v41  ;;  %1256 = vmatmul.mubr.f32.vlgmr.msra.gmra.mrb[16].mxu1 %v1118_v41  ;;  %v1298_v41 = vrot.slane %v3900_v19, 6 }
 0x36c   :  { %2645 = vmatpush1.bf16.msra.mxu0 %v3394_v13  ;;  %2677 = vmatpush1.bf16.msra.mxu1 %v3626_v37 }
 0x36d   :  { %2647 = vmatprep.subr.bf16.mxu0 %v3409_v18  ;;  %2679 = vmatprep.subr.bf16.mxu1 %v3629_v38 }
 0x36e   :  { %1372 = vmatprep.mubr.f32.mxu0 %v3112_v7  ;;  %1443 = vmatprep.mubr.f32.mxu1 %v3112_v7 }
 0x370   :  { %2649 = vmatpush1.bf16.msra.mxu0 %v3437_v29  ;;  %2681 = vmatpush1.bf16.msra.mxu1 %v3648_v44 }
 0x371   :  { %2651 = vmatprep.subr.bf16.mxu0 %v3446_v33  ;;  %2683 = vmatprep.subr.bf16.mxu1 %v3652_v45 }
 0x374   :  { %2653 = vmatpush1.bf16.msra.mxu0 %v3473_v42  ;;  %2685 = vmatpush1.bf16.msra.mxu1 %v3670_v51 }
 0x375   :  { %2655 = vmatprep.subr.bf16.mxu0 %v3491_v49  ;;  %2687 = vmatprep.subr.bf16.mxu1 %v3673_v52 }
 0x378   :  { %2657 = vmatpush1.bf16.msra.mxu0 %v3505_v55  ;;  %2689 = vmatpush1.bf16.msra.mxu1 %v3690_v59 }
 0x379   :  { %2659 = vmatprep.subr.bf16.mxu0 %v3509_v57  ;;  %2691 = vmatprep.subr.bf16.mxu1 %v3693_v60 }
 0x37c   :  { %2661 = vmatpush1.bf16.msra.mxu0 %v3534_v1  ;;  %2693 = vmatpush1.bf16.msra.mxu1 %v3710_v4 }
 0x37d   :  { %2663 = vmatprep.subr.bf16.mxu0 %v3537_v3  ;;  %2695 = vmatprep.subr.bf16.mxu1 %v3713_v5 }
 0x380   :  { %2665 = vmatpush1.bf16.msra.mxu0 %v3561_v11  ;;  %2697 = vmatpush1.bf16.msra.mxu1 %v3730_v12 }
 0x381   :  { %2667 = vmatprep.subr.bf16.mxu0 %v3564_v14  ;;  %2699 = vmatprep.subr.bf16.mxu1 %v3733_v15 }
 0x384   :  { %2669 = vmatpush1.bf16.msra.mxu0 %v3588_v23  ;;  %2701 = vmatpush1.bf16.msra.mxu1 %v3750_v21 }
 0x385   :  { %2671 = vmatprep.subr.bf16.mxu0 %v3591_v25  ;;  %2703 = vmatprep.subr.bf16.mxu1 %v3753_v24 }
 0x388   :  { %2673 = vmatpush1.bf16.msra.mxu0 %v3608_v31  ;;  %2705 = vmatpush1.bf16.msra.mxu1 %v3764_v28 }
 0x389   :  { %2707 = vmatprep.subr.bf16.mxu0 %v3333_v62  ;;  %2739 = vmatprep.subr.bf16.mxu1 %v3611_v32 }
 0x43e   :  { %v1186_v63 = vpop.f32.mrb[10].mxu0  ;;  %v1257_v46 = vpop.f32.mrb[16].mxu1 }
 0x43f   :  { %v1266_v48 = vrot.slane %v1186_v63, 2  ;;  %v1188_v36 = vpop.f32.mrb[11].mxu0  ;;  %v1259_v22 = vpop.f32.mrb[17].mxu1  ;;  %v1268_v2 = vrot.slane %v1257_v46, 2 }
 0x440   :  { %v1267_v47 = vrot.slane %v1188_v36, 2  ;;  %v1269_v16 = vrot.slane %v1259_v22, 2 }
 0x441   :  { %v1274_v56 = vadd.f32 %v1266_v48, %v3804_v26  ;;  %v1276_v17 = vadd.f32 %v1268_v2, %v3810_v53 }
 0x442   :  { %v1275_v0 = vadd.f32 %v1267_v47, %v3802_v10  ;;  %v1277_v35 = vadd.f32 %v1269_v16, %v3812_v61 }
 0x443   :  { %v2240_v6 = vmul.f32 -1.442695, %v1274_v56  ;;  %v2242_v30 = vmul.f32 -1.442695, %v1276_v17 }
 0x444   :  { %v2241_v8 = vmul.f32 -1.442695, %v1275_v0 }
 0x445   :  { %2993 = vpow2.f32 %v2240_v6 }
 0x446   :  { %2995 = vpow2.f32 %v2241_v8 }
 0x447   :  { %2997 = vtanh.f32 %v1277_v35 }
 0x448   :  { %2999 = vpow2.f32 %v2242_v30 }
 0x44f   :  { %v2994_v34 = vpop.eup %2993 }
 0x450   :  { %v1287_v9 = vadd.f32 1.0, %v2994_v34  ;;  %v2996_v43 = vpop.eup %2995 }
 0x451   :  { %v1288_v26 = vadd.f32 1.0, %v2996_v43  ;;  %v2998_v10 = vpop.eup %2997 }
 0x452   :  { %3001 = vrcp.f32 %v1287_v9  ;;  %v3000_v20 = vpop.eup %2999 }
 0x453   :  { %3003 = vrcp.f32 %v1288_v26  ;;  %v1289_v48 = vadd.f32 1.0, %v3000_v20 }
 0x455   :  { %3005 = vrcp.f32 %v1289_v48 }
 0x45c   :  { %v3002_v40 = vpop.eup %3001 }
 0x45d   :  { %v1301_v63 = vmul.f32 %v3002_v40, %v2998_v10  ;;  %v3004_v46 = vpop.eup %3003 }
 0x45e   :  { %v1300_v53 = vmul.f32 %v3004_v46, %v1298_v41 }
 0x45f   :  { %v3006_v61 = vpop.eup %3005 }
 0x460   :  { %v3942_v36 = vadd.f32 %v1301_v63, %v1300_v53 }
 0x462   :  { %3007 = vtanh.f32 %v3942_v36  ;;  %v1474_v46 = vrot.slane %v3942_v36, 6 }
 0x46c   :  { %v3008_v22 = vpop.eup %3007 }
 0x46d   :  { %v1304_v47 = vmul.f32 %v3008_v22, %v3006_v61 }
 0x46f   :  { %v1306_v56 = vrot.slane %v1304_v47, 6 }
 0x471   :  { %1373 = vmatmul.mubr.f32.vlgmr.msra.gmra.mrb[12].mxu0 %v1306_v56  ;;  %1444 = vmatmul.mubr.f32.vlgmr.msra.gmra.mrb[18].mxu1 %v1306_v56 }
 0x472   :  { %2709 = vmatpush1.bf16.msra.mxu0 %v3394_v13  ;;  %2741 = vmatpush1.bf16.msra.mxu1 %v3626_v37 }
 0x473   :  { %2711 = vmatprep.subr.bf16.mxu0 %v3409_v18  ;;  %2743 = vmatprep.subr.bf16.mxu1 %v3629_v38 }
 0x474   :  { %1545 = vmatprep.mubr.f32.mxu0 %v3112_v7  ;;  %1616 = vmatprep.mubr.f32.mxu1 %v3112_v7 }
 0x476   :  { %2713 = vmatpush1.bf16.msra.mxu0 %v3437_v29  ;;  %2745 = vmatpush1.bf16.msra.mxu1 %v3648_v44 }
 0x477   :  { %2715 = vmatprep.subr.bf16.mxu0 %v3446_v33  ;;  %2747 = vmatprep.subr.bf16.mxu1 %v3652_v45 }
 0x47a   :  { %2717 = vmatpush1.bf16.msra.mxu0 %v3473_v42  ;;  %2749 = vmatpush1.bf16.msra.mxu1 %v3670_v51 }
 0x47b   :  { %2719 = vmatprep.subr.bf16.mxu0 %v3491_v49  ;;  %2751 = vmatprep.subr.bf16.mxu1 %v3673_v52 }
 0x47e   :  { %2721 = vmatpush1.bf16.msra.mxu0 %v3505_v55  ;;  %2753 = vmatpush1.bf16.msra.mxu1 %v3690_v59 }
 0x47f   :  { %2723 = vmatprep.subr.bf16.mxu0 %v3509_v57  ;;  %2755 = vmatprep.subr.bf16.mxu1 %v3693_v60 }
 0x482   :  { %2725 = vmatpush1.bf16.msra.mxu0 %v3534_v1  ;;  %2757 = vmatpush1.bf16.msra.mxu1 %v3710_v4 }
 0x483   :  { %2727 = vmatprep.subr.bf16.mxu0 %v3537_v3  ;;  %2759 = vmatprep.subr.bf16.mxu1 %v3713_v5 }
 0x486   :  { %2729 = vmatpush1.bf16.msra.mxu0 %v3561_v11  ;;  %2761 = vmatpush1.bf16.msra.mxu1 %v3730_v12 }
 0x487   :  { %2731 = vmatprep.subr.bf16.mxu0 %v3564_v14  ;;  %2763 = vmatprep.subr.bf16.mxu1 %v3733_v15 }
 0x48a   :  { %2733 = vmatpush1.bf16.msra.mxu0 %v3588_v23  ;;  %2765 = vmatpush1.bf16.msra.mxu1 %v3750_v21 }
 0x48b   :  { %2735 = vmatprep.subr.bf16.mxu0 %v3591_v25  ;;  %2767 = vmatprep.subr.bf16.mxu1 %v3753_v24 }
 0x48e   :  { %2737 = vmatpush1.bf16.msra.mxu0 %v3608_v31  ;;  %2769 = vmatpush1.bf16.msra.mxu1 %v3764_v28 }
 0x48f   :  { %2771 = vmatprep.subr.bf16.mxu0 %v3333_v62  ;;  %2803 = vmatprep.subr.bf16.mxu1 %v3611_v32 }
 0x544   :  { %v1374_v19 = vpop.f32.mrb[12].mxu0  ;;  %v1445_v0 = vpop.f32.mrb[18].mxu1 }
 0x545   :  { %v1450_v6 = vadd.f32 %v1374_v19, %v3794_v54  ;;  %v1376_v8 = vpop.f32.mrb[13].mxu0  ;;  %v1447_v2 = vpop.f32.mrb[19].mxu1  ;;  %v1452_v30 = vadd.f32 %v1445_v0, %v3798_v27 }
 0x546   :  { %v1451_v16 = vadd.f32 %v1376_v8, %v3796_v58  ;;  %v1453_v34 = vadd.f32 %v1447_v2, %v3800_v39 }
 0x547   :  { %v2243_v17 = vmul.f32 -1.442695, %v1450_v6  ;;  %v2245_v9 = vmul.f32 -1.442695, %v1452_v30 }
 0x548   :  { %v2244_v35 = vmul.f32 -1.442695, %v1451_v16 }
 0x549   :  { %3009 = vpow2.f32 %v2243_v17 }
 0x54a   :  { %3011 = vpow2.f32 %v2244_v35 }
 0x54b   :  { %3013 = vtanh.f32 %v1453_v34 }
 0x54c   :  { %3015 = vpow2.f32 %v2245_v9 }
 0x553   :  { %v3010_v43 = vpop.eup %3009 }
 0x554   :  { %v1463_v26 = vadd.f32 1.0, %v3010_v43  ;;  %v3012_v10 = vpop.eup %3011 }
 0x555   :  { %v1464_v20 = vadd.f32 1.0, %v3012_v10  ;;  %v3014_v40 = vpop.eup %3013 }
 0x556   :  { %3017 = vrcp.f32 %v1463_v26  ;;  %v3016_v41 = vpop.eup %3015 }
 0x557   :  { %3019 = vrcp.f32 %v1464_v20  ;;  %v1465_v61 = vadd.f32 1.0, %v3016_v41 }
 0x559   :  { %3021 = vrcp.f32 %v1465_v61 }
 0x560   :  { %v3018_v63 = vpop.eup %3017 }
 0x561   :  { %v1477_v48 = vmul.f32 %v3018_v63, %v3014_v40  ;;  %v3020_v53 = vpop.eup %3019 }
 0x562   :  { %v1476_v22 = vmul.f32 %v3020_v53, %v1474_v46 }
 0x563   :  { %v3022_v56 = vpop.eup %3021 }
 0x564   :  { %v3984_v47 = vadd.f32 %v1477_v48, %v1476_v22 }
 0x566   :  { %3023 = vtanh.f32 %v3984_v47  ;;  %v1659_v61 = vrot.slane %v3984_v47, 6 }
 0x570   :  { %v3024_v19 = vpop.eup %3023 }
 0x571   :  { %v1480_v0 = vmul.f32 %v3024_v19, %v3022_v56 }
 0x573   :  { %1546 = vmatmul.mubr.f32.vlgmr.msra.gmra.mrb[14].mxu0 %v1480_v0  ;;  %1617 = vmatmul.mubr.f32.vlgmr.msra.gmra.mrb[20].mxu1 %v1480_v0 }
 0x574   :  { %2773 = vmatpush1.bf16.msra.mxu0 %v3394_v13  ;;  %2805 = vmatpush1.bf16.msra.mxu1 %v3626_v37 }
 0x575   :  { %2775 = vmatprep.subr.bf16.mxu0 %v3409_v18  ;;  %2807 = vmatprep.subr.bf16.mxu1 %v3629_v38 }
 0x576   :  { %1733 = vmatprep.mubr.f32.mxu0 %v3112_v7  ;;  %1804 = vmatprep.mubr.f32.mxu1 %v3112_v7 }
 0x578   :  { %2777 = vmatpush1.bf16.msra.mxu0 %v3437_v29  ;;  %2809 = vmatpush1.bf16.msra.mxu1 %v3648_v44 }
 0x579   :  { %2779 = vmatprep.subr.bf16.mxu0 %v3446_v33  ;;  %2811 = vmatprep.subr.bf16.mxu1 %v3652_v45 }
 0x57c   :  { %2781 = vmatpush1.bf16.msra.mxu0 %v3473_v42  ;;  %2813 = vmatpush1.bf16.msra.mxu1 %v3670_v51 }
 0x57d   :  { %2783 = vmatprep.subr.bf16.mxu0 %v3491_v49  ;;  %2815 = vmatprep.subr.bf16.mxu1 %v3673_v52 }
 0x580   :  { %2785 = vmatpush1.bf16.msra.mxu0 %v3505_v55  ;;  %2817 = vmatpush1.bf16.msra.mxu1 %v3690_v59 }
 0x581   :  { %2787 = vmatprep.subr.bf16.mxu0 %v3509_v57  ;;  %2819 = vmatprep.subr.bf16.mxu1 %v3693_v60 }
 0x584   :  { %2789 = vmatpush1.bf16.msra.mxu0 %v3534_v1  ;;  %2821 = vmatpush1.bf16.msra.mxu1 %v3710_v4 }
 0x585   :  { %2791 = vmatprep.subr.bf16.mxu0 %v3537_v3  ;;  %2823 = vmatprep.subr.bf16.mxu1 %v3713_v5 }
 0x588   :  { %2793 = vmatpush1.bf16.msra.mxu0 %v3561_v11  ;;  %2825 = vmatpush1.bf16.msra.mxu1 %v3730_v12 }
 0x589   :  { %2795 = vmatprep.subr.bf16.mxu0 %v3564_v14  ;;  %2827 = vmatprep.subr.bf16.mxu1 %v3733_v15 }
 0x58c   :  { %2797 = vmatpush1.bf16.msra.mxu0 %v3588_v23  ;;  %2829 = vmatpush1.bf16.msra.mxu1 %v3750_v21 }
 0x58d   :  { %2799 = vmatprep.subr.bf16.mxu0 %v3591_v25  ;;  %2831 = vmatprep.subr.bf16.mxu1 %v3753_v24 }
 0x590   :  { %2801 = vmatpush1.bf16.msra.mxu0 %v3608_v31  ;;  %2833 = vmatpush1.bf16.msra.mxu1 %v3764_v28 }
 0x591   :  { %2835 = vmatprep.subr.bf16.mxu0 %v3333_v62  ;;  %2867 = vmatprep.subr.bf16.mxu1 %v3611_v32 }
 0x646   :  { %v1547_v36 = vpop.f32.mrb[14].mxu0  ;;  %v1618_v6 = vpop.f32.mrb[20].mxu1 }
 0x647   :  { %v1627_v8 = vrot.slane %v1547_v36, 6  ;;  %v1549_v2 = vpop.f32.mrb[15].mxu0  ;;  %v1620_v16 = vpop.f32.mrb[21].mxu1  ;;  %v1629_v43 = vrot.slane %v1618_v6, 6 }
 0x648   :  { %v1628_v17 = vrot.slane %v1549_v2, 6  ;;  %v1630_v26 = vrot.slane %v1620_v16, 6 }
 0x649   :  { %v1635_v35 = vadd.f32 %v1627_v8, %v3794_v54  ;;  %v1637_v62 = vadd.f32 %v1629_v43, %v3798_v27  ;;  %v2060_v43 = vld [vmem:[%s4191_s5] sm:$0xff] }
 0x64a   :  { %v1636_v30 = vadd.f32 %v1628_v17, %v3796_v58  ;;  %v1638_v32 = vadd.f32 %v1630_v26, %v3800_v39 }
 0x64b   :  { %v2246_v34 = vmul.f32 -1.442695, %v1635_v35  ;;  %v2248_v10 = vmul.f32 -1.442695, %v1637_v62  ;;  %v2078_v62 = vld [vmem:[%s4191_s5 + $0x90] sm:$0xff] }
 0x64c   :  { %v2247_v9 = vmul.f32 -1.442695, %v1636_v30  ;;  %v2076_v30 = vld [vmem:[%s4191_s5 + $0x80] sm:$0xff] }
 0x64d   :  { %3025 = vpow2.f32 %v2246_v34  ;;  %v2077_v34 = vld [vmem:[%s4191_s5 + $0x88] sm:$0xff] }
 0x64e   :  { %3027 = vpow2.f32 %v2247_v9  ;;  %v2898_v9 = vpack.c.bf16 %v2077_v34, %v2076_v30 }
 0x64f   :  { %3029 = vtanh.f32 %v1638_v32  ;;  %v2079_v32 = vld [vmem:[%s4191_s5 + $0x98] sm:$0xff] }
 0x650   :  { %3031 = vpow2.f32 %v2248_v10  ;;  %v2902_v10 = vpack.c.bf16 %v2079_v32, %v2078_v62 }
 0x657   :  { %v3026_v20 = vpop.eup %3025 }
 0x658   :  { %v1648_v40 = vadd.f32 1.0, %v3026_v20  ;;  %v3028_v41 = vpop.eup %3027  ;;  %v2062_v20 = vld [vmem:[%s4191_s5 + $0x10] sm:$0xff] }
 0x659   :  { %v1649_v63 = vadd.f32 1.0, %v3028_v41  ;;  %v3030_v46 = vpop.eup %3029 }
 0x65a   :  { %3033 = vrcp.f32 %v1648_v40  ;;  %v3032_v48 = vpop.eup %3031  ;;  %v2063_v40 = vld [vmem:[%s4191_s5 + $0x18] sm:$0xff] }
 0x65b   :  { %3035 = vrcp.f32 %v1649_v63  ;;  %v1650_v19 = vadd.f32 1.0, %v3032_v48  ;;  %v2904_v41 = vpack.c.bf16 %v2063_v40, %v2062_v20  ;;  %v2080_v63 = vld [vmem:[%s4191_s5 + $0xa0] sm:$0xff] }
 0x65d   :  { %3037 = vrcp.f32 %v1650_v19  ;;  %v2083_v19 = vld [vmem:[%s4191_s5 + $0xb8] sm:$0xff] }
 0x664   :  { %v3034_v53 = vpop.eup %3033 }
 0x665   :  { %v1662_v22 = vmul.f32 %v3034_v53, %v3030_v46  ;;  %v3036_v56 = vpop.eup %3035  ;;  %v2081_v46 = vld [vmem:[%s4191_s5 + $0xa8] sm:$0xff]  ;;  %v2064_v53 = vld [vmem:[%s4191_s5 + $0x20] sm:$0xff] }
 0x666   :  { %v1661_v0 = vmul.f32 %v3036_v56, %v1659_v61  ;;  %v2906_v48 = vpack.c.bf16 %v2081_v46, %v2080_v63  ;;  %v2065_v61 = vld [vmem:[%s4191_s5 + $0x28] sm:$0xff]  ;;  %v2082_v56 = vld [vmem:[%s4191_s5 + $0xb0] sm:$0xff] }
 0x667   :  { %v3038_v6 = vpop.eup %3037 }
 0x668   :  { %v4026_v36 = vadd.f32 %v1662_v22, %v1661_v0  ;;  %v2908_v22 = vpack.c.bf16 %v2065_v61, %v2064_v53  ;;  %v2910_v0 = vpack.c.bf16 %v2083_v19, %v2082_v56 }
 0x66a   :  { %3039 = vtanh.f32 %v4026_v36 }
 0x674   :  { %v3040_v8 = vpop.eup %3039 }
 0x675   :  { %v1665_v2 = vmul.f32 %v3040_v8, %v3038_v6  ;;  %v2067_v6 = vld [vmem:[%s4191_s5 + $0x38] sm:$0xff] }
 0x677   :  { %v1667_v16 = vrot.slane %v1665_v2, 2  ;;  %v2084_v2 = vld [vmem:[%s4191_s5 + $0xc0] sm:$0xff] }
 0x679   :  { %1734 = vmatmul.mubr.f32.vlgmr.msra.gmra.mrb[16].mxu0 %v1667_v16  ;;  %1805 = vmatmul.mubr.f32.vlgmr.msra.gmra.mrb[22].mxu1 %v1667_v16  ;;  %v2085_v16 = vld [vmem:[%s4191_s5 + $0xc8] sm:$0xff] }
 0x67a   :  { %2837 = vmatpush1.bf16.msra.mxu0 %v3394_v13  ;;  %2869 = vmatpush1.bf16.msra.mxu1 %v3626_v37 }
 0x67b   :  { %2839 = vmatprep.subr.bf16.mxu0 %v3409_v18  ;;  %2871 = vmatprep.subr.bf16.mxu1 %v3629_v38 }
 0x67c   :  { %1921 = vmatprep.mubr.f32.mxu0 %v3112_v7  ;;  %1992 = vmatprep.mubr.f32.mxu1 %v3112_v7 }
 0x67e   :  { %2841 = vmatpush1.bf16.msra.mxu0 %v3437_v29  ;;  %2873 = vmatpush1.bf16.msra.mxu1 %v3648_v44 }
 0x67f   :  { %2843 = vmatprep.subr.bf16.mxu0 %v3446_v33  ;;  %2875 = vmatprep.subr.bf16.mxu1 %v3652_v45 }
 0x682   :  { %2845 = vmatpush1.bf16.msra.mxu0 %v3473_v42  ;;  %2877 = vmatpush1.bf16.msra.mxu1 %v3670_v51 }
 0x683   :  { %2847 = vmatprep.subr.bf16.mxu0 %v3491_v49  ;;  %2879 = vmatprep.subr.bf16.mxu1 %v3673_v52 }
 0x686   :  { %2849 = vmatpush1.bf16.msra.mxu0 %v3505_v55  ;;  %2881 = vmatpush1.bf16.msra.mxu1 %v3690_v59  ;;  %v1847_v59 = vrot.slane %v4026_v36, 6  ;;  %v2066_v36 = vld [vmem:[%s4191_s5 + $0x30] sm:$0xff] }
 0x687   :  { %2851 = vmatprep.subr.bf16.mxu0 %v3509_v57  ;;  %2883 = vmatprep.subr.bf16.mxu1 %v3693_v60  ;;  %v2912_v8 = vpack.c.bf16 %v2067_v6, %v2066_v36 }
 0x68a   :  { %2853 = vmatpush1.bf16.msra.mxu0 %v3534_v1  ;;  %2885 = vmatpush1.bf16.msra.mxu1 %v3710_v4 }
 0x68b   :  { %2855 = vmatprep.subr.bf16.mxu0 %v3537_v3  ;;  %2887 = vmatprep.subr.bf16.mxu1 %v3713_v5 }
 0x68e   :  { %2857 = vmatpush1.bf16.msra.mxu0 %v3561_v11  ;;  %2889 = vmatpush1.bf16.msra.mxu1 %v3730_v12 }
 0x68f   :  { %2859 = vmatprep.subr.bf16.mxu0 %v3564_v14  ;;  %2891 = vmatprep.subr.bf16.mxu1 %v3733_v15 }
 0x692   :  { %2861 = vmatpush1.bf16.msra.mxu0 %v3588_v23  ;;  %2893 = vmatpush1.bf16.msra.mxu1 %v3750_v21 }
 0x693   :  { %2863 = vmatprep.subr.bf16.mxu0 %v3591_v25  ;;  %2895 = vmatprep.subr.bf16.mxu1 %v3753_v24 }
 0x696   :  { %2865 = vmatpush1.bf16.msra.mxu0 %v3608_v31  ;;  %2897 = vmatpush1.bf16.msra.mxu1 %v3764_v28  ;;  %v2059_v28 = vmax.f32 %v3808_v50, 0.0  ;;  %v2061_v50 = vld [vmem:[%s4191_s5 + $0x8] sm:$0xff] }
 0x697   :  { %v2900_v26 = vpack.c.bf16 %v2061_v50, %v2060_v43  ;;  %2899 = vmatprep.subr.bf16.mxu0 %v2898_v9 }
 0x698   :  { %v2102_v35 = vrot.slane %v2059_v28, 6 }
 0x74c   :  { %v1735_v7 = vpop.f32.mrb[16].mxu0  ;;  %v1806_v13 = vpop.f32.mrb[22].mxu1 }
 0x74d   :  { %v1815_v18 = vrot.slane %v1735_v7, 4  ;;  %v1737_v29 = vpop.f32.mrb[17].mxu0  ;;  %v1808_v33 = vpop.f32.mrb[23].mxu1  ;;  %v1817_v3 = vrot.slane %v1806_v13, 4  ;;  %v2914_v7 = vpack.c.bf16 %v2085_v16, %v2084_v2  ;;  %v2068_v13 = vld [vmem:[%s4191_s5 + $0x40] sm:$0xff] }
 0x74e   :  { %v1816_v42 = vrot.slane %v1737_v29, 4  ;;  %v1818_v11 = vrot.slane %v1808_v33, 4  ;;  %v2086_v33 = vld [vmem:[%s4191_s5 + $0xd0] sm:$0xff] }
 0x74f   :  { %v1823_v49 = vadd.f32 %v1815_v18, %v3794_v54  ;;  %v1825_v14 = vadd.f32 %v1817_v3, %v3798_v27  ;;  %v2069_v18 = vld [vmem:[%s4191_s5 + $0x48] sm:$0xff] }
 0x750   :  { %v1824_v55 = vadd.f32 %v1816_v42, %v3796_v58  ;;  %v1826_v23 = vadd.f32 %v1818_v11, %v3800_v39  ;;  %v2916_v29 = vpack.c.bf16 %v2069_v18, %v2068_v13  ;;  %v2087_v42 = vld [vmem:[%s4191_s5 + $0xd8] sm:$0xff]  ;;  %v2089_v3 = vld [vmem:[%s4191_s5 + $0xe8] sm:$0xff] }
 0x751   :  { %v2249_v57 = vmul.f32 -1.442695, %v1823_v49  ;;  %v2251_v25 = vmul.f32 -1.442695, %v1825_v14  ;;  %v2070_v49 = vld [vmem:[%s4191_s5 + $0x50] sm:$0xff] }
 0x752   :  { %v2250_v1 = vmul.f32 -1.442695, %v1824_v55  ;;  %v2918_v55 = vpack.c.bf16 %v2087_v42, %v2086_v33 }
 0x753   :  { %3041 = vpow2.f32 %v2249_v57  ;;  %v2071_v57 = vld [vmem:[%s4191_s5 + $0x58] sm:$0xff] }
 0x754   :  { %3043 = vpow2.f32 %v2250_v1  ;;  %v2088_v1 = vld [vmem:[%s4191_s5 + $0xe0] sm:$0xff]  ;;  %v2920_v11 = vpack.c.bf16 %v2071_v57, %v2070_v49 }
 0x755   :  { %3045 = vtanh.f32 %v1826_v23  ;;  %v2922_v14 = vpack.c.bf16 %v2089_v3, %v2088_v1  ;;  %v2072_v23 = vld [vmem:[%s4191_s5 + $0x60] sm:$0xff] }
 0x756   :  { %3047 = vpow2.f32 %v2251_v25  ;;  %v2073_v25 = vld [vmem:[%s4191_s5 + $0x68] sm:$0xff] }
 0x75d   :  { %v3042_v31 = vpop.eup %3041 }
 0x75e   :  { %v1836_v37 = vadd.f32 1.0, %v3042_v31  ;;  %v3044_v38 = vpop.eup %3043  ;;  %v2090_v31 = vld [vmem:[%s4191_s5 + $0xf0] sm:$0xff] }
 0x75f   :  { %v1837_v44 = vadd.f32 1.0, %v3044_v38  ;;  %v3046_v45 = vpop.eup %3045  ;;  %v2924_v38 = vpack.c.bf16 %v2073_v25, %v2072_v23 }
 0x760   :  { %3049 = vrcp.f32 %v1836_v37  ;;  %v3048_v51 = vpop.eup %3047  ;;  %v2091_v37 = vld [vmem:[%s4191_s5 + $0xf8] sm:$0xff] }
 0x761   :  { %3051 = vrcp.f32 %v1837_v44  ;;  %v1838_v5 = vadd.f32 1.0, %v3048_v51  ;;  %v2926_v44 = vpack.c.bf16 %v2091_v37, %v2090_v31  ;;  %v2075_v51 = vld [vmem:[%s4191_s5 + $0x78] sm:$0xff] }
 0x763   :  { %3053 = vrcp.f32 %v1838_v5 }
 0x76a   :  { %v3050_v52 = vpop.eup %3049 }
 0x76b   :  { %v1850_v60 = vmul.f32 %v3050_v52, %v3046_v45  ;;  %v3052_v4 = vpop.eup %3051  ;;  %v2074_v45 = vld [vmem:[%s4191_s5 + $0x70] sm:$0xff] }
 0x76c   :  { %v1849_v12 = vmul.f32 %v3052_v4, %v1847_v59  ;;  %v2928_v52 = vpack.c.bf16 %v2075_v51, %v2074_v45 }
 0x76d   :  { %v3054_v21 = vpop.eup %3053 }
 0x76e   :  { %v4066_v15 = vadd.f32 %v1850_v60, %v1849_v12 }
 0x770   :  { %3055 = vtanh.f32 %v4066_v15  ;;  %v2035_v20 = vrot.slane %v4066_v15, 6 }
 0x77a   :  { %v3056_v24 = vpop.eup %3055 }
 0x77b   :  { %v1853_v47 = vmul.f32 %v3056_v24, %v3054_v21 }
 0x77d   :  { %v1855_v17 = vrot.slane %v1853_v47, 4 }
 0x77f   :  { %1922 = vmatmul.mubr.f32.vlgmr.msra.gmra.mrb[18].mxu0 %v1855_v17  ;;  %1993 = vmatmul.mubr.f32.vlgmr.msra.gmra.mrb[24].mxu1 %v1855_v17 }
 0x780   :  { %2169 = vmatprep.mubr.f32.mxu0 %v2102_v35  ;;  %2901 = vmatpush3.bf16.msra.mxu0 %v2900_v26 }
 0x781   :  { %2903 = vmatprep.subr.bf16.mxu0 %v2902_v10 }
 0x784   :  { %2905 = vmatpush3.bf16.msra.mxu0 %v2904_v41 }
 0x785   :  { %2907 = vmatprep.subr.bf16.mxu0 %v2906_v48 }
 0x788   :  { %2909 = vmatpush3.bf16.msra.mxu0 %v2908_v22 }
 0x789   :  { %2911 = vmatprep.subr.bf16.mxu0 %v2910_v0  ;;  %v2257_v0 = vld [vmem:[%s4192_s6] ss:$0 sm:$0xff] }
 0x78c   :  { %2913 = vmatpush3.bf16.msra.mxu0 %v2912_v8 }
 0x78d   :  { %2915 = vmatprep.subr.bf16.mxu0 %v2914_v7 }
 0x790   :  { %2917 = vmatpush3.bf16.msra.mxu0 %v2916_v29 }
 0x791   :  { %2919 = vmatprep.subr.bf16.mxu0 %v2918_v55 }
 0x794   :  { %2921 = vmatpush3.bf16.msra.mxu0 %v2920_v11 }
 0x795   :  { %2923 = vmatprep.subr.bf16.mxu0 %v2922_v14 }
 0x798   :  { %2925 = vmatpush3.bf16.msra.mxu0 %v2924_v38 }
 0x799   :  { %2927 = vmatprep.subr.bf16.mxu0 %v2926_v44 }
 0x79c   :  { %2929 = vmatpush3.bf16.msra.mxu0 %v2928_v52 }
 0x852   :  { %v1923_v59 = vpop.f32.mrb[18].mxu0  ;;  %v1994_v60 = vpop.f32.mrb[24].mxu1 }
 0x853   :  { %v2003_v4 = vrot.slane %v1923_v59, 2  ;;  %v1925_v5 = vpop.f32.mrb[19].mxu0  ;;  %v1996_v12 = vpop.f32.mrb[25].mxu1  ;;  %v2005_v35 = vrot.slane %v1994_v60, 2 }
 0x854   :  { %v2004_v21 = vrot.slane %v1925_v5, 2  ;;  %v2006_v30 = vrot.slane %v1996_v12, 2 }
 0x855   :  { %v2011_v24 = vadd.f32 %v2003_v4, %v3794_v54  ;;  %v2013_v34 = vadd.f32 %v2005_v35, %v3798_v27 }
 0x856   :  { %v2012_v28 = vadd.f32 %v2004_v21, %v3796_v58  ;;  %v2014_v9 = vadd.f32 %v2006_v30, %v3800_v39 }
 0x857   :  { %v2252_v47 = vmul.f32 -1.442695, %v2011_v24  ;;  %v2254_v43 = vmul.f32 -1.442695, %v2013_v34 }
 0x858   :  { %v2253_v17 = vmul.f32 -1.442695, %v2012_v28 }
 0x859   :  { %3057 = vpow2.f32 %v2252_v47 }
 0x85a   :  { %3059 = vpow2.f32 %v2253_v17 }
 0x85b   :  { %3061 = vtanh.f32 %v2014_v9 }
 0x85c   :  { %3063 = vpow2.f32 %v2254_v43 }
 0x863   :  { %v3058_v50 = vpop.eup %3057 }
 0x864   :  { %v2024_v26 = vadd.f32 1.0, %v3058_v50  ;;  %v3060_v62 = vpop.eup %3059 }
 0x865   :  { %v2025_v54 = vadd.f32 1.0, %v3060_v62  ;;  %v3062_v58 = vpop.eup %3061 }
 0x866   :  { %3065 = vrcp.f32 %v2024_v26  ;;  %v3064_v32 = vpop.eup %3063 }
 0x867   :  { %3067 = vrcp.f32 %v2025_v54  ;;  %v2026_v63 = vadd.f32 1.0, %v3064_v32 }
 0x869   :  { %3069 = vrcp.f32 %v2026_v63 }
 0x870   :  { %v3066_v10 = vpop.eup %3065 }
 0x871   :  { %v2038_v40 = vmul.f32 %v3066_v10, %v3062_v58  ;;  %v3068_v41 = vpop.eup %3067 }
 0x872   :  { %v2037_v27 = vmul.f32 %v3068_v41, %v2035_v20 }
 0x873   :  { %v3070_v39 = vpop.eup %3069 }
 0x874   :  { %v2039_v46 = vadd.f32 %v2038_v40, %v2037_v27 }
 0x876   :  { %3071 = vtanh.f32 %v2039_v46 }
 0x880   :  { %v3072_v48 = vpop.eup %3071 }
 0x881   :  { %v2041_v53 = vmul.f32 %v3072_v48, %v3070_v39 }
 0x883   :  { %v2058_v61 = vmax.f32 %v2041_v53, 0.0 }
 0x885   :  { %v2101_v22 = vrot.slane %v2058_v61, 6 }
 0x887   :  { %2170 = vmatmul.mubr.f32.vlgmr.msra.gmra.mrb[20].mxu0 %v2101_v22 }
 0x95a   :  { %v2300_v56 = vpop.f32.mrb[20].mxu0 }
 0x95b   :  { %v2301_v19 = vpop.f32.mrb[21].mxu0 }
 0x95c   :  { %v2302_v15 = vadd.f32 %v2301_v19, %v2300_v56 }
 0x95e   :  { %v2172_v36 = vadd.f32 %v2302_v15, %v2257_v0 }
 0x960   :  { %2176 = vst.msk [vmem:[#allocation6] sm:$0x3] %vm2175_vm2, %v2172_v36 }
 0x961   :  { %3096 = shalt.err (!%p3093_p9)
}
 0x962   :  { %s3097_s19 = scalar_lea.hbm %s4193_s7, 32 }
 0x963   :  { %p3098_p10 = scmp.ne.s32.totalorder %s4193_s7, %s3097_s19  ;;  %p3101_p11 = scmp.lt.u32.totalorder %s3097_s19, %s4193_s7 }
 0x965   :  { %p3103_p12 = pnand %p3101_p11, %p3098_p10 }
 0x967   :  { %3106 = shalt.err (!%p3103_p12)
}
 0x968   :  { %2186 = dma.vmem_to_hbm [thread:$0]  %s2184_s2, 32, %s4193_s7, [#allocation4]  }
 0x969   :  { %3109 = dma.done.wait [#allocation4], 32  }
 0x96a   :  { %3110 = vsyncadd [#allocation4], 4294967264 }
 0x96b   :  { %2190 = vsyncpa [#allocation4], 1 }
 0x96c   :  { %2191 = vsyncpa [#allocation5], 1 }

</bundles_post_ra>
